<compile_context>
chip_gen: v6e
topology: v6e:2x2x1
jax: 0.10.0
libtpu: 0.0.40
codegen_flags: <defaults>
</compile_context>

<pallas_src>
import math
from functools import partial

import jax
import jax.numpy as jnp
from jax.experimental import pallas as pl
from jax.experimental.pallas import tpu as pltpu


def cross_attention_kernel(q_in_ref, kv_in_ref,
                           wq_ref, wkv_ref, wo_ref,
                           bq_ref, bkv_ref, bo_ref,
                           o_ref, *, num_heads: int):
    # q_in_ref / kv_in_ref: [1, S, E] blocks (one batch element per grid step).
    x_q = q_in_ref[0]          # [S, E]
    x_kv = kv_in_ref[0]        # [S, E]

    E = x_q.shape[-1]
    d = E // num_heads

    # Projections.  The 1/sqrt(d) scale is pre-folded into wq_ref / bq_ref.
    # K and V are produced by one fused [E, 2E] matmul (shared input x_kv).
    q = jnp.dot(x_q, wq_ref[...], preferred_element_type=jnp.float32) + bq_ref[...]
    kv = jnp.dot(x_kv, wkv_ref[...], preferred_element_type=jnp.float32) + bkv_ref[...]

    # bf16 for MXU attention matmuls; softmax math stays in f32.
    q_bf = q.astype(jnp.bfloat16)       # [S, E]
    kv_bf = kv.astype(jnp.bfloat16)     # [S, 2E]  layout: [K | V]

    wo = wo_ref[...]                    # [E, E] (pre-transposed)

    # TODO(synk): for large feature maps (S = H*W >~ 1024) replace the resident
    # [S, S] score matrix with a KV-blocked online-softmax (flash-style) loop.
    acc = None
    for h in range(num_heads):
        lo, hi = h * d, (h + 1) * d
        q_h = q_bf[:, lo:hi]            # [S, d]
        k_h = kv_bf[:, lo:hi]           # [S, d]
        v_h = kv_bf[:, E + lo:E + hi]   # [S, d]

        # q_h . k_h^T without an explicit transpose: contract the d axis.
        s = jax.lax.dot_general(q_h, k_h, (((1,), (1,)), ((), ())),
                                preferred_element_type=jnp.float32)   # [S, S]
        s = s - jnp.max(s, axis=-1, keepdims=True)
        p = jnp.exp(s)
        p = p * pl.reciprocal(jnp.sum(p, axis=-1, keepdims=True), approx=True)

        o_h = jnp.dot(p.astype(jnp.bfloat16), v_h,
                      preferred_element_type=jnp.float32)             # [S, d]
        # Fold head concat into the output projection: sublane slice of W_o.
        contrib = jnp.dot(o_h, wo[lo:hi, :],
                          preferred_element_type=jnp.float32)         # [S, E]
        acc = contrib if acc is None else acc + contrib

    out = acc + bo_ref[...]
    o_ref[0] = out.astype(o_ref.dtype)


def cross_attention_pallas(q_bse, kv_bse, params, num_heads):
    """q_bse, kv_bse: [B, S, E] float32."""
    B, S, E = q_bse.shape
    wq_t, wkv_t, wo_t, bq, bkv, bo = params

    seq_spec = pl.BlockSpec((1, S, E), lambda b: (b, 0, 0))
    wq_spec = pl.BlockSpec((E, E), lambda b: (0, 0))
    wkv_spec = pl.BlockSpec((E, 2 * E), lambda b: (0, 0))
    wo_spec = pl.BlockSpec((E, E), lambda b: (0, 0))
    bq_spec = pl.BlockSpec((1, E), lambda b: (0, 0))
    bkv_spec = pl.BlockSpec((1, 2 * E), lambda b: (0, 0))
    bo_spec = pl.BlockSpec((1, E), lambda b: (0, 0))

    return pl.pallas_call(
        partial(cross_attention_kernel, num_heads=num_heads),
        out_shape=jax.ShapeDtypeStruct((B, S, E), jnp.float32),
        grid_spec=pltpu.PrefetchScalarGridSpec(
            num_scalar_prefetch=0,
            grid=(B,),
            in_specs=[seq_spec, seq_spec,
                      wq_spec, wkv_spec, wo_spec,
                      bq_spec, bkv_spec, bo_spec],
            out_specs=seq_spec,
        ),
        compiler_params=pltpu.CompilerParams(
            dimension_semantics=("parallel",)),
    )(q_bse, kv_bse, wq_t, wkv_t, wo_t, bq, bkv, bo)


class CrossAttentionPallas:
    """Mirror of the PyTorch CrossAttention module (num_heads=4 by default)."""

    def __init__(self, embed_dim, num_heads=4, key=None):
        assert embed_dim % num_heads == 0
        self.embed_dim = embed_dim
        self.num_heads = num_heads
        head_dim = embed_dim // num_heads
        scale = 1.0 / math.sqrt(head_dim)
        if key is None:
            key = jax.random.PRNGKey(42)
        ks = jax.random.split(key, 5)
        s = 1.0 / math.sqrt(embed_dim)
        # nn.MultiheadAttention weights (stored pre-transposed: x @ W^T == x @ w_t).
        wq = jax.random.normal(ks[0], (embed_dim, embed_dim), jnp.float32) * s
        wk = jax.random.normal(ks[1], (embed_dim, embed_dim), jnp.float32) * s
        wv = jax.random.normal(ks[2], (embed_dim, embed_dim), jnp.float32) * s
        wo = jax.random.normal(ks[3], (embed_dim, embed_dim), jnp.float32) * s
        bvec = jax.random.normal(ks[4], (4, embed_dim), jnp.float32) * 0.01
        bq, bk, bv, bo = bvec[0:1], bvec[1:2], bvec[2:3], bvec[3:4]

        # Kernel params: scale folded into wq/bq; K|V weights/biases fused.
        wkv_t = jnp.concatenate([wk.T, wv.T], axis=1)      # [E, 2E]
        bkv = jnp.concatenate([bk, bv], axis=1)            # [1, 2E]
        self.params = (wq.T * scale, wkv_t, wo.T, bq * scale, bkv, bo)
        # Unfused / unscaled params for the pure-JAX reference.
        self.ref_params = (wq.T, wk.T, wv.T, wo.T, bq, bk, bv, bo)

    def __call__(self, unet_features, style_embedding):
        # unet_features / style_embedding: NCHW [B, C, H, W]
        B, C, H, W = unet_features.shape
        assert C == self.embed_dim
        # NCHW -> [B, S, E]; sequence order matches torch permute(2,3,0,1).
        q_bse = jnp.transpose(unet_features, (0, 2, 3, 1)).reshape(B, H * W, C)
        kv_bse = jnp.transpose(style_embedding, (0, 2, 3, 1)).reshape(B, H * W, C)
        out_bse = cross_attention_pallas(q_bse, kv_bse, self.params, self.num_heads)
        # [B, S, E] -> NCHW
        return jnp.transpose(out_bse.reshape(B, H, W, C), (0, 3, 1, 2))


def _reference(q_bse, kv_bse, ref_params, num_heads):
    """Pure-JAX reference (same math as torch MultiheadAttention forward)."""
    wq_t, wk_t, wv_t, wo_t, bq, bk, bv, bo = ref_params
    B, S, E = q_bse.shape
    d = E // num_heads
    q = q_bse @ wq_t + bq
    k = kv_bse @ wk_t + bk
    v = kv_bse @ wv_t + bv
    q = q.reshape(B, S, num_heads, d).transpose(0, 2, 1, 3) / math.sqrt(d)
    k = k.reshape(B, S, num_heads, d).transpose(0, 2, 1, 3)
    v = v.reshape(B, S, num_heads, d).transpose(0, 2, 1, 3)
    s = jnp.einsum("bhqd,bhkd->bhqk", q, k)
    p = jax.nn.softmax(s, axis=-1)
    o = jnp.einsum("bhqk,bhkd->bhqd", p, v)
    o = o.transpose(0, 2, 1, 3).reshape(B, S, E)
    return o @ wo_t + bo


if __name__ == "__main__":
    B, C, H, W = 2, 32, 8, 8   # embed_dim = C = 32, num_heads = 4, S = 64
    key = jax.random.PRNGKey(0)
    k1, k2 = jax.random.split(key)
    unet_features = jax.random.normal(k1, (B, C, H, W), jnp.float32)
    style_embedding = jax.random.normal(k2, (B, C, H, W), jnp.float32)

    module = CrossAttentionPallas(embed_dim=C, num_heads=4)
    out = module(unet_features, style_embedding)
    out = jax.block_until_ready(out)
    assert out.shape == (B, C, H, W)

    # Validate against pure-JAX reference (bf16 matmuls + approx reciprocal in
    # the kernel -> slightly looser tolerance than pure f32).
    q_bse = jnp.transpose(unet_features, (0, 2, 3, 1)).reshape(B, H * W, C)
    kv_bse = jnp.transpose(style_embedding, (0, 2, 3, 1)).reshape(B, H * W, C)
    ref_bse = _reference(q_bse, kv_bse, module.ref_params, module.num_heads)
    ref = jnp.transpose(ref_bse.reshape(B, H, W, C), (0, 3, 1, 2))
    assert jnp.allclose(out, ref, atol=2e-2, rtol=2e-2), "mismatch vs reference"

    print("KERNEL_OK")
</pallas_src>

<mosaic_0001>
module attributes {stable_mosaic.version = 11 : i64} {
  func.func @cross_attention_kernel(%arg0: i32, %arg1: memref<1x64x32xf32, #tpu.memory_space<vmem>>, %arg2: memref<1x64x32xf32, #tpu.memory_space<vmem>>, %arg3: memref<32x32xf32, #tpu.memory_space<vmem>>, %arg4: memref<32x64xf32, #tpu.memory_space<vmem>>, %arg5: memref<32x32xf32, #tpu.memory_space<vmem>>, %arg6: memref<1x32xf32, #tpu.memory_space<vmem>>, %arg7: memref<1x64xf32, #tpu.memory_space<vmem>>, %arg8: memref<1x32xf32, #tpu.memory_space<vmem>>, %arg9: memref<1x64x32xf32, #tpu.memory_space<vmem>>) attributes {dimension_semantics = [#tpu.dimension_semantics<parallel>], iteration_bounds = array<i64: 2>, scalar_prefetch = 0 : i64, scratch_operands = 0 : i64, tpu.core_type = #tpu.core_type<tc>, window_params = [{transform_indices = @transform_0, window_bounds = array<i64: 1, 64, 32>}, {transform_indices = @transform_1, window_bounds = array<i64: 1, 64, 32>}, {pipeline_mode = #tpu.pipeline_mode<synchronous>, transform_indices = @transform_2, window_bounds = array<i64: 32, 32>}, {pipeline_mode = #tpu.pipeline_mode<synchronous>, transform_indices = @transform_3, window_bounds = array<i64: 32, 64>}, {pipeline_mode = #tpu.pipeline_mode<synchronous>, transform_indices = @transform_4, window_bounds = array<i64: 32, 32>}, {pipeline_mode = #tpu.pipeline_mode<synchronous>, transform_indices = @transform_5, window_bounds = array<i64: 1, 32>}, {pipeline_mode = #tpu.pipeline_mode<synchronous>, transform_indices = @transform_6, window_bounds = array<i64: 1, 64>}, {pipeline_mode = #tpu.pipeline_mode<synchronous>, transform_indices = @transform_7, window_bounds = array<i64: 1, 32>}, {transform_indices = @transform_8, window_bounds = array<i64: 1, 64, 32>}]} {
    %c0 = arith.constant 0 : index
    %c0_0 = arith.constant 0 : index
    %c0_1 = arith.constant 0 : index
    %0 = vector.load %arg1[%c0, %c0_0, %c0_1] : memref<1x64x32xf32, #tpu.memory_space<vmem>>, vector<1x64x32xf32>
    %1 = vector.shape_cast %0 : vector<1x64x32xf32> to vector<64x32xf32>
    %c0_2 = arith.constant 0 : index
    %c0_3 = arith.constant 0 : index
    %c0_4 = arith.constant 0 : index
    %2 = vector.load %arg2[%c0_2, %c0_3, %c0_4] : memref<1x64x32xf32, #tpu.memory_space<vmem>>, vector<1x64x32xf32>
    %3 = vector.shape_cast %2 : vector<1x64x32xf32> to vector<64x32xf32>
    %c0_5 = arith.constant 0 : index
    %c0_6 = arith.constant 0 : index
    %4 = vector.load %arg3[%c0_5, %c0_6] : memref<32x32xf32, #tpu.memory_space<vmem>>, vector<32x32xf32>
    %cst = arith.constant dense<0.000000e+00> : vector<64x32xf32>
    %5 = tpu.matmul %1, %4, %cst {dimension_numbers = #tpu.dot_dimension_numbers<[1], [0], [0], [1], [0, 0, 1, 1], [], []>} : vector<64x32xf32>, vector<32x32xf32>, vector<64x32xf32> -> vector<64x32xf32>
    %c0_7 = arith.constant 0 : index
    %c0_8 = arith.constant 0 : index
    %6 = vector.load %arg6[%c0_7, %c0_8] : memref<1x32xf32, #tpu.memory_space<vmem>>, vector<1x32xf32>
    %7 = vector.broadcast %6 : vector<1x32xf32> to vector<64x32xf32>
    %8 = arith.addf %5, %7 : vector<64x32xf32>
    %c0_9 = arith.constant 0 : index
    %c0_10 = arith.constant 0 : index
    %9 = vector.load %arg4[%c0_9, %c0_10] : memref<32x64xf32, #tpu.memory_space<vmem>>, vector<32x64xf32>
    %cst_11 = arith.constant dense<0.000000e+00> : vector<64x64xf32>
    %10 = tpu.matmul %3, %9, %cst_11 {dimension_numbers = #tpu.dot_dimension_numbers<[1], [0], [0], [1], [0, 0, 1, 1], [], []>} : vector<64x32xf32>, vector<32x64xf32>, vector<64x64xf32> -> vector<64x64xf32>
    %c0_12 = arith.constant 0 : index
    %c0_13 = arith.constant 0 : index
    %11 = vector.load %arg7[%c0_12, %c0_13] : memref<1x64xf32, #tpu.memory_space<vmem>>, vector<1x64xf32>
    %12 = vector.broadcast %11 : vector<1x64xf32> to vector<64x64xf32>
    %13 = arith.addf %10, %12 : vector<64x64xf32>
    %14 = arith.truncf %8 : vector<64x32xf32> to vector<64x32xbf16>
    %15 = arith.truncf %13 : vector<64x64xf32> to vector<64x64xbf16>
    %c0_14 = arith.constant 0 : index
    %c0_15 = arith.constant 0 : index
    %16 = vector.load %arg5[%c0_14, %c0_15] : memref<32x32xf32, #tpu.memory_space<vmem>>, vector<32x32xf32>
    %17 = vector.extract_strided_slice %14 {offsets = [0, 0], sizes = [64, 8], strides = [1, 1]} : vector<64x32xbf16> to vector<64x8xbf16>
    %18 = vector.extract_strided_slice %15 {offsets = [0, 0], sizes = [64, 8], strides = [1, 1]} : vector<64x64xbf16> to vector<64x8xbf16>
    %19 = vector.extract_strided_slice %15 {offsets = [0, 32], sizes = [64, 8], strides = [1, 1]} : vector<64x64xbf16> to vector<64x8xbf16>
    %cst_16 = arith.constant dense<0.000000e+00> : vector<64x64xf32>
    %20 = tpu.matmul %17, %18, %cst_16 {dimension_numbers = #tpu.dot_dimension_numbers<[1], [1], [0], [0], [0, 0, 1, 0], [], []>} : vector<64x8xbf16>, vector<64x8xbf16>, vector<64x64xf32> -> vector<64x64xf32>
    %cst_17 = arith.constant dense<0xFF800000> : vector<64xf32>
    %21 = vector.multi_reduction <maximumf>, %20, %cst_17 [1] : vector<64x64xf32> to vector<64xf32>
    %22 = vector.shape_cast %21 : vector<64xf32> to vector<64x1xf32>
    %23 = vector.broadcast %22 : vector<64x1xf32> to vector<64x64xf32>
    %24 = arith.subf %20, %23 : vector<64x64xf32>
    %25 = math.exp %24 : vector<64x64xf32>
    %cst_18 = arith.constant dense<0.000000e+00> : vector<64xf32>
    %26 = vector.multi_reduction <add>, %25, %cst_18 [1] : vector<64x64xf32> to vector<64xf32>
    %27 = vector.shape_cast %26 : vector<64xf32> to vector<64x1xf32>
    %28 = tpu.reciprocal %27 {approx = true} : vector<64x1xf32> -> vector<64x1xf32>
    %29 = vector.broadcast %28 : vector<64x1xf32> to vector<64x64xf32>
    %30 = arith.mulf %25, %29 : vector<64x64xf32>
    %31 = arith.truncf %30 : vector<64x64xf32> to vector<64x64xbf16>
    %cst_19 = arith.constant dense<0.000000e+00> : vector<64x8xf32>
    %32 = tpu.matmul %31, %19, %cst_19 {dimension_numbers = #tpu.dot_dimension_numbers<[1], [0], [0], [1], [0, 0, 1, 1], [], []>} : vector<64x64xbf16>, vector<64x8xbf16>, vector<64x8xf32> -> vector<64x8xf32>
    %33 = vector.extract_strided_slice %16 {offsets = [0, 0], sizes = [8, 32], strides = [1, 1]} : vector<32x32xf32> to vector<8x32xf32>
    %cst_20 = arith.constant dense<0.000000e+00> : vector<64x32xf32>
    %34 = tpu.matmul %32, %33, %cst_20 {dimension_numbers = #tpu.dot_dimension_numbers<[1], [0], [0], [1], [0, 0, 1, 1], [], []>} : vector<64x8xf32>, vector<8x32xf32>, vector<64x32xf32> -> vector<64x32xf32>
    %35 = vector.extract_strided_slice %14 {offsets = [0, 8], sizes = [64, 8], strides = [1, 1]} : vector<64x32xbf16> to vector<64x8xbf16>
    %36 = vector.extract_strided_slice %15 {offsets = [0, 8], sizes = [64, 8], strides = [1, 1]} : vector<64x64xbf16> to vector<64x8xbf16>
    %37 = vector.extract_strided_slice %15 {offsets = [0, 40], sizes = [64, 8], strides = [1, 1]} : vector<64x64xbf16> to vector<64x8xbf16>
    %cst_21 = arith.constant dense<0.000000e+00> : vector<64x64xf32>
    %38 = tpu.matmul %35, %36, %cst_21 {dimension_numbers = #tpu.dot_dimension_numbers<[1], [1], [0], [0], [0, 0, 1, 0], [], []>} : vector<64x8xbf16>, vector<64x8xbf16>, vector<64x64xf32> -> vector<64x64xf32>
    %cst_22 = arith.constant dense<0xFF800000> : vector<64xf32>
    %39 = vector.multi_reduction <maximumf>, %38, %cst_22 [1] : vector<64x64xf32> to vector<64xf32>
    %40 = vector.shape_cast %39 : vector<64xf32> to vector<64x1xf32>
    %41 = vector.broadcast %40 : vector<64x1xf32> to vector<64x64xf32>
    %42 = arith.subf %38, %41 : vector<64x64xf32>
    %43 = math.exp %42 : vector<64x64xf32>
    %cst_23 = arith.constant dense<0.000000e+00> : vector<64xf32>
    %44 = vector.multi_reduction <add>, %43, %cst_23 [1] : vector<64x64xf32> to vector<64xf32>
    %45 = vector.shape_cast %44 : vector<64xf32> to vector<64x1xf32>
    %46 = tpu.reciprocal %45 {approx = true} : vector<64x1xf32> -> vector<64x1xf32>
    %47 = vector.broadcast %46 : vector<64x1xf32> to vector<64x64xf32>
    %48 = arith.mulf %43, %47 : vector<64x64xf32>
    %49 = arith.truncf %48 : vector<64x64xf32> to vector<64x64xbf16>
    %cst_24 = arith.constant dense<0.000000e+00> : vector<64x8xf32>
    %50 = tpu.matmul %49, %37, %cst_24 {dimension_numbers = #tpu.dot_dimension_numbers<[1], [0], [0], [1], [0, 0, 1, 1], [], []>} : vector<64x64xbf16>, vector<64x8xbf16>, vector<64x8xf32> -> vector<64x8xf32>
    %51 = vector.extract_strided_slice %16 {offsets = [8, 0], sizes = [8, 32], strides = [1, 1]} : vector<32x32xf32> to vector<8x32xf32>
    %cst_25 = arith.constant dense<0.000000e+00> : vector<64x32xf32>
    %52 = tpu.matmul %50, %51, %cst_25 {dimension_numbers = #tpu.dot_dimension_numbers<[1], [0], [0], [1], [0, 0, 1, 1], [], []>} : vector<64x8xf32>, vector<8x32xf32>, vector<64x32xf32> -> vector<64x32xf32>
    %53 = arith.addf %34, %52 : vector<64x32xf32>
    %54 = vector.extract_strided_slice %14 {offsets = [0, 16], sizes = [64, 8], strides = [1, 1]} : vector<64x32xbf16> to vector<64x8xbf16>
    %55 = vector.extract_strided_slice %15 {offsets = [0, 16], sizes = [64, 8], strides = [1, 1]} : vector<64x64xbf16> to vector<64x8xbf16>
    %56 = vector.extract_strided_slice %15 {offsets = [0, 48], sizes = [64, 8], strides = [1, 1]} : vector<64x64xbf16> to vector<64x8xbf16>
    %cst_26 = arith.constant dense<0.000000e+00> : vector<64x64xf32>
    %57 = tpu.matmul %54, %55, %cst_26 {dimension_numbers = #tpu.dot_dimension_numbers<[1], [1], [0], [0], [0, 0, 1, 0], [], []>} : vector<64x8xbf16>, vector<64x8xbf16>, vector<64x64xf32> -> vector<64x64xf32>
    %cst_27 = arith.constant dense<0xFF800000> : vector<64xf32>
    %58 = vector.multi_reduction <maximumf>, %57, %cst_27 [1] : vector<64x64xf32> to vector<64xf32>
    %59 = vector.shape_cast %58 : vector<64xf32> to vector<64x1xf32>
    %60 = vector.broadcast %59 : vector<64x1xf32> to vector<64x64xf32>
    %61 = arith.subf %57, %60 : vector<64x64xf32>
    %62 = math.exp %61 : vector<64x64xf32>
    %cst_28 = arith.constant dense<0.000000e+00> : vector<64xf32>
    %63 = vector.multi_reduction <add>, %62, %cst_28 [1] : vector<64x64xf32> to vector<64xf32>
    %64 = vector.shape_cast %63 : vector<64xf32> to vector<64x1xf32>
    %65 = tpu.reciprocal %64 {approx = true} : vector<64x1xf32> -> vector<64x1xf32>
    %66 = vector.broadcast %65 : vector<64x1xf32> to vector<64x64xf32>
    %67 = arith.mulf %62, %66 : vector<64x64xf32>
    %68 = arith.truncf %67 : vector<64x64xf32> to vector<64x64xbf16>
    %cst_29 = arith.constant dense<0.000000e+00> : vector<64x8xf32>
    %69 = tpu.matmul %68, %56, %cst_29 {dimension_numbers = #tpu.dot_dimension_numbers<[1], [0], [0], [1], [0, 0, 1, 1], [], []>} : vector<64x64xbf16>, vector<64x8xbf16>, vector<64x8xf32> -> vector<64x8xf32>
    %70 = vector.extract_strided_slice %16 {offsets = [16, 0], sizes = [8, 32], strides = [1, 1]} : vector<32x32xf32> to vector<8x32xf32>
    %cst_30 = arith.constant dense<0.000000e+00> : vector<64x32xf32>
    %71 = tpu.matmul %69, %70, %cst_30 {dimension_numbers = #tpu.dot_dimension_numbers<[1], [0], [0], [1], [0, 0, 1, 1], [], []>} : vector<64x8xf32>, vector<8x32xf32>, vector<64x32xf32> -> vector<64x32xf32>
    %72 = arith.addf %53, %71 : vector<64x32xf32>
    %73 = vector.extract_strided_slice %14 {offsets = [0, 24], sizes = [64, 8], strides = [1, 1]} : vector<64x32xbf16> to vector<64x8xbf16>
    %74 = vector.extract_strided_slice %15 {offsets = [0, 24], sizes = [64, 8], strides = [1, 1]} : vector<64x64xbf16> to vector<64x8xbf16>
    %75 = vector.extract_strided_slice %15 {offsets = [0, 56], sizes = [64, 8], strides = [1, 1]} : vector<64x64xbf16> to vector<64x8xbf16>
    %cst_31 = arith.constant dense<0.000000e+00> : vector<64x64xf32>
    %76 = tpu.matmul %73, %74, %cst_31 {dimension_numbers = #tpu.dot_dimension_numbers<[1], [1], [0], [0], [0, 0, 1, 0], [], []>} : vector<64x8xbf16>, vector<64x8xbf16>, vector<64x64xf32> -> vector<64x64xf32>
    %cst_32 = arith.constant dense<0xFF800000> : vector<64xf32>
    %77 = vector.multi_reduction <maximumf>, %76, %cst_32 [1] : vector<64x64xf32> to vector<64xf32>
    %78 = vector.shape_cast %77 : vector<64xf32> to vector<64x1xf32>
    %79 = vector.broadcast %78 : vector<64x1xf32> to vector<64x64xf32>
    %80 = arith.subf %76, %79 : vector<64x64xf32>
    %81 = math.exp %80 : vector<64x64xf32>
    %cst_33 = arith.constant dense<0.000000e+00> : vector<64xf32>
    %82 = vector.multi_reduction <add>, %81, %cst_33 [1] : vector<64x64xf32> to vector<64xf32>
    %83 = vector.shape_cast %82 : vector<64xf32> to vector<64x1xf32>
    %84 = tpu.reciprocal %83 {approx = true} : vector<64x1xf32> -> vector<64x1xf32>
    %85 = vector.broadcast %84 : vector<64x1xf32> to vector<64x64xf32>
    %86 = arith.mulf %81, %85 : vector<64x64xf32>
    %87 = arith.truncf %86 : vector<64x64xf32> to vector<64x64xbf16>
    %cst_34 = arith.constant dense<0.000000e+00> : vector<64x8xf32>
    %88 = tpu.matmul %87, %75, %cst_34 {dimension_numbers = #tpu.dot_dimension_numbers<[1], [0], [0], [1], [0, 0, 1, 1], [], []>} : vector<64x64xbf16>, vector<64x8xbf16>, vector<64x8xf32> -> vector<64x8xf32>
    %89 = vector.extract_strided_slice %16 {offsets = [24, 0], sizes = [8, 32], strides = [1, 1]} : vector<32x32xf32> to vector<8x32xf32>
    %cst_35 = arith.constant dense<0.000000e+00> : vector<64x32xf32>
    %90 = tpu.matmul %88, %89, %cst_35 {dimension_numbers = #tpu.dot_dimension_numbers<[1], [0], [0], [1], [0, 0, 1, 1], [], []>} : vector<64x8xf32>, vector<8x32xf32>, vector<64x32xf32> -> vector<64x32xf32>
    %91 = arith.addf %72, %90 : vector<64x32xf32>
    %c0_36 = arith.constant 0 : index
    %c0_37 = arith.constant 0 : index
    %92 = vector.load %arg8[%c0_36, %c0_37] : memref<1x32xf32, #tpu.memory_space<vmem>>, vector<1x32xf32>
    %93 = vector.broadcast %92 : vector<1x32xf32> to vector<64x32xf32>
    %94 = arith.addf %91, %93 : vector<64x32xf32>
    %c0_38 = arith.constant 0 : index
    %c0_39 = arith.constant 0 : index
    %c0_40 = arith.constant 0 : index
    %95 = vector.load %arg9[%c0_38, %c0_39, %c0_40] : memref<1x64x32xf32, #tpu.memory_space<vmem>>, vector<1x64x32xf32>
    %96 = vector.shape_cast %95 : vector<1x64x32xf32> to vector<64x32xf32>
    %97 = vector.shape_cast %94 : vector<64x32xf32> to vector<1x64x32xf32>
    tpu.vector_store %arg9[%c0_38, %c0_39, %c0_40], %97 {strides = array<i32>} : memref<1x64x32xf32, #tpu.memory_space<vmem>>, vector<1x64x32xf32>,
    return
  }
  func.func @transform_0(%arg0: i32) -> (i32, i32, i32) {
    %c0_i32 = arith.constant 0 : i32
    %c0_i32_0 = arith.constant 0 : i32
    %c0_i32_1 = arith.constant 0 : i32
    return %arg0, %c0_i32, %c0_i32_0 : i32, i32, i32
  }
  func.func @transform_1(%arg0: i32) -> (i32, i32, i32) {
    %c0_i32 = arith.constant 0 : i32
    %c0_i32_0 = arith.constant 0 : i32
    %c0_i32_1 = arith.constant 0 : i32
    return %arg0, %c0_i32, %c0_i32_0 : i32, i32, i32
  }
  func.func @transform_2(%arg0: i32) -> (i32, i32) {
    %c0_i32 = arith.constant 0 : i32
    %c0_i32_0 = arith.constant 0 : i32
    %c0_i32_1 = arith.constant 0 : i32
    return %c0_i32, %c0_i32_0 : i32, i32
  }
  func.func @transform_3(%arg0: i32) -> (i32, i32) {
    %c0_i32 = arith.constant 0 : i32
    %c0_i32_0 = arith.constant 0 : i32
    %c0_i32_1 = arith.constant 0 : i32
    return %c0_i32, %c0_i32_0 : i32, i32
  }
  func.func @transform_4(%arg0: i32) -> (i32, i32) {
    %c0_i32 = arith.constant 0 : i32
    %c0_i32_0 = arith.constant 0 : i32
    %c0_i32_1 = arith.constant 0 : i32
    return %c0_i32, %c0_i32_0 : i32, i32
  }
  func.func @transform_5(%arg0: i32) -> (i32, i32) {
    %c0_i32 = arith.constant 0 : i32
    %c0_i32_0 = arith.constant 0 : i32
    %c0_i32_1 = arith.constant 0 : i32
    return %c0_i32, %c0_i32_0 : i32, i32
  }
  func.func @transform_6(%arg0: i32) -> (i32, i32) {
    %c0_i32 = arith.constant 0 : i32
    %c0_i32_0 = arith.constant 0 : i32
    %c0_i32_1 = arith.constant 0 : i32
    return %c0_i32, %c0_i32_0 : i32, i32
  }
  func.func @transform_7(%arg0: i32) -> (i32, i32) {
    %c0_i32 = arith.constant 0 : i32
    %c0_i32_0 = arith.constant 0 : i32
    %c0_i32_1 = arith.constant 0 : i32
    return %c0_i32, %c0_i32_0 : i32, i32
  }
  func.func @transform_8(%arg0: i32) -> (i32, i32, i32) {
    %c0_i32 = arith.constant 0 : i32
    %c0_i32_0 = arith.constant 0 : i32
    %c0_i32_1 = arith.constant 0 : i32
    return %arg0, %c0_i32, %c0_i32_0 : i32, i32, i32
  }
}

</mosaic_0001>

<bundles_post_ra>
// kernel: tpu_custom_call.1
= control target key start
LH: loop header
LB: loop body
LE: loop exit
PB: predicated region body
PF: predicated region fallthrough
CT: control target
= control target key end

     0   :  { %s3062_s27 = smov 0   ;;  %s3596_s0 = inlined_call_operand.vmem [shape: f32[2,64,32], index: 0, kind: input, shape index: {}]   ;;  %s3597_s1 = inlined_call_operand.vmem [shape: f32[2,64,32], index: 1, kind: input, shape index: {}]   ;;  %s3598_s2 = inlined_call_operand.vmem [shape: f32[32,32], index: 2, kind: input, shape index: {}]   ;;  %s3599_s3 = inlined_call_operand.vmem [shape: f32[32,64], index: 3, kind: input, shape index: {}]   ;;  %s3600_s4 = inlined_call_operand.vmem [shape: f32[32,32], index: 4, kind: input, shape index: {}]   ;;  %s3601_s5 = inlined_call_operand.vmem [shape: f32[1,32], index: 5, kind: input, shape index: {}]   ;;  %s3602_s6 = inlined_call_operand.vmem [shape: f32[1,64], index: 6, kind: input, shape index: {}]   ;;  %s3603_s7 = inlined_call_operand.vmem [shape: f32[1,32], index: 7, kind: input, shape index: {}]   ;;  %s3604_s8 = inlined_call_operand.vmem [shape: f32[2,64,32], index: 8, kind: output, shape index: {}]  }
   0x1 LB: > { %s2396_s28 = sadd.s32 4294967295, %s3008_s27   ;;  %p2400_p0 = scmp.ge.s32.totalorder %s3008_s27, 1  ;;  %s3008_s27 = sphi %s3062_s27, %s18_s27  }
   0x2   : > { %p272_p1 = scmp.lt.s32.totalorder %s3008_s27, 3 }
   0x4   : > { %p273_p2 = pnand %p2400_p0, %p272_p1 }
   0x5   : > { %p311_p3 = scmp.lt.s32.totalorder (!%p273_p2), %s2396_s28, 1  ;;  %s3010_s13 = smov (!%p273_p2), 96  }
   0x6   : > { %276 = sbr.rel (%p273_p2) target bundleno = 2822 (0xb06), region = 52  ;;  %s3011_s14 = smov (!%p273_p2), 120  }
   0x7   : > { %s3012_s17 = smov (!%p273_p2), 88   ;;  %s3013_s18 = smov (!%p273_p2), 112  }
   0x8   : > { %s3014_s19 = smov (!%p273_p2), 104   ;;  %s3015_s23 = smov (!%p273_p2), 80  }
   0x9   : > { %s3016_s26 = smov (!%p273_p2), 72  }
   0xb   : > { %v487_v0 = vld [vmem:[%s3599_s3 + $0x18] sm:$0xff]  ;;  %v486_v1 = vld [vmem:[%s3599_s3 + $0x10] sm:$0xff]  ;;  %v485_v4 = vld [vmem:[%s3599_s3 + $0x8] sm:$0xff]  ;;  %s3606_s28 = smov (!%p311_p3, %s2396_s28), 1  ;;  %vm354_vm0 = vcmask 261120   ;;  %vm636_vm1 = vcmask 64512  }
   0xc   : > { %2639 = vmatprep.subr.mxu1 %v487_v0  ;;  %v346_v2 = vld [vmem:[%s3598_s2 + $0x18] sm:$0xff]  ;;  %v345_v3 = vld [vmem:[%s3598_s2 + $0x10] sm:$0xff]  ;;  %v344_v5 = vld [vmem:[%s3598_s2 + $0x8] sm:$0xff]  ;;  %s3091_s21 = sshll.u32 %s3606_s28, 6  ;;  %vm726_vm2 = vcmask 523264  }
   0xd   : > { %2640 = vmatpush3.msra.mxu1 %v487_v0  ;;  %2619 = vmatprep.subr.mxu0 %v346_v2  ;;  %v484_v6 = vld [vmem:[%s3599_s3] sm:$0xff]  ;;  %s3097_s24 = scalar_lea.vmem %s3597_s1, %s3091_s21  ;;  %s3108_s30 = scalar_lea.vmem %s3596_s0, %s3091_s21 }
   0xe   : > { %2641 = vmatprep.subr.mxu1 %v486_v1  ;;  %2620 = vmatpush3.msra.mxu0 %v346_v2  ;;  %v335_v7 = vld [vmem:[%s3097_s24] sm:$0xff]  ;;  %v336_v8 = vld [vmem:[%s3097_s24 + $0x8] sm:$0xff]  ;;  %v337_v10 = vld [vmem:[%s3097_s24 + $0x10] sm:$0xff]  ;;  %s325_s12 = scalar_lea.vmem %s3604_s8, %s3091_s21 }
   0xf   : > { %2642 = vmatpush3.msra.mxu1 %v486_v1  ;;  %2621 = vmatprep.subr.mxu0 %v345_v3  ;;  %v343_v9 = vld [vmem:[%s3598_s2] sm:$0xff]  ;;  %v328_v12 = vld [vmem:[%s3108_s30 + $0x8] sm:$0xff]  ;;  %v338_v13 = vld [vmem:[%s3097_s24 + $0x18] sm:$0xff] }
  0x10   : > { %2643 = vmatprep.subr.mxu1 %v485_v4  ;;  %2622 = vmatpush3.msra.mxu0 %v345_v3  ;;  %v327_v11 = vld [vmem:[%s3108_s30] sm:$0xff]  ;;  %v329_v14 = vld [vmem:[%s3108_s30 + $0x10] sm:$0xff]  ;;  %v330_v16 = vld [vmem:[%s3108_s30 + $0x18] sm:$0xff] }
  0x11   : > { %2644 = vmatpush3.msra.mxu1 %v485_v4  ;;  %2623 = vmatprep.subr.mxu0 %v344_v5  ;;  %v339_v15 = vld [vmem:[%s3097_s24 + $0x20] sm:$0xff]  ;;  %v340_v17 = vld [vmem:[%s3097_s24 + $0x28] sm:$0xff]  ;;  %v341_v19 = vld [vmem:[%s3097_s24 + $0x30] sm:$0xff] }
  0x12   : > { %2645 = vmatprep.subr.mxu1 %v484_v6  ;;  %2647 = vmatprep.mubr.msk.f32.mxu1 %vm354_vm0, %v335_v7  ;;  %v331_v18 = vld [vmem:[%s3108_s30 + $0x20] sm:$0xff]  ;;  %v332_v20 = vld [vmem:[%s3108_s30 + $0x28] sm:$0xff]  ;;  %v342_v21 = vld [vmem:[%s3097_s24 + $0x38] sm:$0xff] }
  0x13   : > { %2646 = vmatpush3.msra.mxu1 %v484_v6  ;;  %2624 = vmatpush3.msra.mxu0 %v344_v5  ;;  %v333_v22 = vld [vmem:[%s3108_s30 + $0x30] sm:$0xff]  ;;  %v334_v23 = vld [vmem:[%s3108_s30 + $0x38] sm:$0xff]  ;;  %v2407_v25 = vld [vmem:[%s3601_s5] ss:$0 sm:$0xff] }
  0x14   : > { %2648 = vmatmul.mubr.msk.f32.vlgmr.msra.gmra.mxu1 %vm354_vm0, %v336_v8  ;;  %2625 = vmatprep.subr.mxu0 %v343_v9  ;;  %v2416_v37 = vld [vmem:[%s3602_s6] ss:$0 sm:$0xff] }
  0x15   : > { %2650 = vmatprep.mubr.msk.f32.mxu1 %vm354_vm0, %v337_v10  ;;  %2626 = vmatpush3.msra.mxu0 %v343_v9 }
  0x16   : > { %2627 = vmatprep.mubr.msk.f32.mxu0 %vm354_vm0, %v327_v11 }
  0x17   : > { %2628 = vmatmul.mubr.msk.f32.vlgmr.msra.gmra.mxu0 %vm354_vm0, %v328_v12 }
  0x18   : > { %2651 = vmatmul.mubr.msk.f32.gmra.mxu1 %vm354_vm0, %v338_v13  ;;  %2630 = vmatprep.mubr.msk.f32.mxu0 %vm354_vm0, %v329_v14 }
  0x19   : > { %2653 = vmatprep.mubr.msk.f32.mxu1 %vm354_vm0, %v339_v15 }
  0x1b   : > { %2631 = vmatmul.mubr.msk.f32.gmra.mxu0 %vm354_vm0, %v330_v16 }
  0x1c   : > { %2654 = vmatmul.mubr.msk.f32.gmra.mxu1 %vm354_vm0, %v340_v17  ;;  %2633 = vmatprep.mubr.msk.f32.mxu0 %vm354_vm0, %v331_v18 }
  0x1d   : > { %2656 = vmatprep.mubr.msk.f32.mxu1 %vm354_vm0, %v341_v19 }
  0x1f   : > { %2634 = vmatmul.mubr.msk.f32.gmra.mxu0 %vm354_vm0, %v332_v20 }
  0x20   : > { %2657 = vmatmul.mubr.msk.f32.gmra.mxu1 %vm354_vm0, %v342_v21  ;;  %2636 = vmatprep.mubr.msk.f32.mxu0 %vm354_vm0, %v333_v22 }
  0x23   : > { %2637 = vmatmul.mubr.msk.f32.gmra.mxu0 %vm354_vm0, %v334_v23 }
  0xd4   : > { %v2649_v24 = vpop.f32.mrf.mxu1 }
  0xd5   : > { %v591_v52 = vadd.f32 %v2649_v24, %v2416_v37 }
  0xd6   : > { %v585_v26 = vpop.f32.mrf.mxu1 }
  0xd7   : > { %v2629_v27 = vpop.f32.mrf.mxu0  ;;  %v586_v51 = vadd.f32 %v2416_v37, %v585_v26 }
  0xd8   : > { %v2652_v28 = vpop.f32.mrf.mxu1  ;;  %v451_v29 = vadd.f32 %v2629_v27, %v2407_v25 }
  0xd9   : > { %v445_v30 = vpop.f32.mrf.mxu0  ;;  %v601_v47 = vadd.f32 %v2652_v28, %v2416_v37  ;;  %v3166_v54 = vpack.c.bf16 %v591_v52, %v586_v51 }
  0xda   : > { %v595_v31 = vpop.f32.mrf.mxu1  ;;  %v446_v32 = vadd.f32 %v2407_v25, %v445_v30 }
  0xdb   : > { %v596_v46 = vadd.f32 %v2416_v37, %v595_v31  ;;  %v2632_v50 = vpop.f32.mrf.mxu0  ;;  %v650_v58 = vsel %vm636_vm1, %v3166_v54, 0 }
  0xdc   : > { %v2655_v33 = vpop.f32.mrf.mxu1  ;;  %v3143_v34 = vpack.c.bf16 %v451_v29, %v446_v32  ;;  %v461_v62 = vadd.f32 %v2632_v50, %v2407_v25 }
  0xdd   : > { %v611_v42 = vadd.f32 %v2655_v33, %v2416_v37  ;;  %v3160_v48 = vpack.c.bf16 %v601_v47, %v596_v46  ;;  %v455_v53 = vpop.f32.mrf.mxu0 }
  0xde   : > { %v605_v35 = vpop.f32.mrf.mxu1  ;;  %2667 = vmatprep.mubr.msk.bf16.mxu0 %vm636_vm1, %v3143_v34  ;;  %v456_v63 = vadd.f32 %v2407_v25, %v455_v53 }
  0xdf   : > { %v606_v39 = vadd.f32 %v2416_v37, %v605_v35  ;;  %v653_v55 = vsel %vm636_vm1, %v3160_v48, 0  ;;  %v2635_v56 = vpop.f32.mrf.mxu0 }
  0xe0   : > { %v2658_v36 = vpop.f32.mrf.mxu1  ;;  %v471_v59 = vadd.f32 %v2635_v56, %v2407_v25  ;;  %v3176_v2 = vpack.c.bf16 %v461_v62, %v456_v63 }
  0xe1   : > { %v621_v40 = vadd.f32 %v2658_v36, %v2416_v37  ;;  %v3152_v44 = vpack.c.bf16 %v611_v42, %v606_v39  ;;  %v465_v57 = vpop.f32.mrf.mxu0 }
  0xe2   : > { %v615_v38 = vpop.f32.mrf.mxu1  ;;  %v466_v60 = vadd.f32 %v2407_v25, %v465_v57 }
  0xe3   : > { %v616_v41 = vadd.f32 %v2416_v37, %v615_v38  ;;  %v656_v49 = vsel %vm636_vm1, %v3152_v44, 0  ;;  %v2638_v61 = vpop.f32.mrf.mxu0 }
  0xe4   : > { %v3174_v0 = vpack.c.bf16 %v471_v59, %v466_v60  ;;  %v481_v3 = vadd.f32 %v2638_v61, %v2407_v25 }
  0xe5   : > { %v3150_v43 = vpack.c.bf16 %v621_v40, %v616_v41  ;;  %v475_v1 = vpop.f32.mrf.mxu0 }
  0xe6   : > { %v476_v4 = vadd.f32 %v2407_v25, %v475_v1 }
  0xe7   : > { %2843 = vmatprep.subr.msk.bf16.mxu0 %vm636_vm1, %v3150_v43  ;;  %v659_v45 = vsel %vm636_vm1, %v3150_v43, 0 }
  0xe8   : > { %2660 = vmatpush3.bf16.xpose.msra.mxu0 %v659_v45  ;;  %v3182_v5 = vpack.c.bf16 %v481_v3, %v476_v4 }
  0xe9   : > { %2844 = vmatprep.subr.msk.bf16.mxu0 %vm636_vm1, %v3152_v44 }
  0xf0   : > { %2662 = vmatpush3.bf16.xpose.msra.mxu0 %v656_v49 }
  0xf1   : > { %2845 = vmatprep.subr.msk.bf16.mxu0 %vm636_vm1, %v3160_v48 }
  0xf8   : > { %2664 = vmatpush3.bf16.xpose.msra.mxu0 %v653_v55 }
  0xf9   : > { %2846 = vmatprep.subr.msk.bf16.mxu0 %vm636_vm1, %v3166_v54 }
 0x100   : > { %2666 = vmatpush3.bf16.xpose.msra.mxu0 %v650_v58 }
 0x107   : > { %2668 = vmatmul.mubr.msk.bf16.vlgmr.msra.gmra.mxu0 %vm636_vm1, %v3176_v2 }
 0x108   : > { %2671 = vmatprep.mubr.msk.bf16.mxu0 %vm636_vm1, %v3174_v0 }
 0x10f   : > { %2672 = vmatmul.mubr.msk.bf16.gmra.mxu0 %vm636_vm1, %v3182_v5 }
 0x1c7   : > { %v2669_v6 = vpop.f32.mrf.mxu0 }
 0x1c8   : > { %v733_v7 = vsel %vm726_vm2, %v2669_v6, -inf }
 0x1c9   : > { %734 = vmax.xlane.f32.xlu1 %v733_v7  ;;  %v695_v8 = vpop.f32.mrf.mxu0 }
 0x1ca   : > { %v727_v9 = vsel %vm726_vm2, %v695_v8, -inf }
 0x1cb   : > { %728 = vmax.xlane.f32.xlu0 %v727_v9  ;;  %v2670_v10 = vpop.f32.mrf.mxu0 }
 0x1cc   : > { %v736_v11 = vsel %vm726_vm2, %v2670_v10, -inf }
 0x1cd   : > { %737 = vmax.xlane.f32.xlu1 %v736_v11  ;;  %v698_v12 = vpop.f32.mrf.mxu0 }
 0x1ce   : > { %v730_v13 = vsel %vm726_vm2, %v698_v12, -inf }
 0x1cf   : > { %731 = vmax.xlane.f32.xlu0 %v730_v13  ;;  %v2673_v14 = vpop.f32.mrf.mxu0 }
 0x1d0   : > { %v745_v15 = vsel %vm726_vm2, %v2673_v14, -inf }
 0x1d1   : > { %v711_v16 = vpop.f32.mrf.mxu0 }
 0x1d2   : > { %v739_v20 = vsel %vm726_vm2, %v711_v16, -inf }
 0x1d3   : > { %746 = vmax.xlane.f32.xlu0 %v745_v15  ;;  %v2674_v17 = vpop.f32.mrf.mxu0 }
 0x1d4   : > { %v748_v18 = vsel %vm726_vm2, %v2674_v17, -inf }
 0x1d5   : > { %749 = vmax.xlane.f32.xlu1 %v748_v18  ;;  %v714_v19 = vpop.f32.mrf.mxu0 }
 0x1d6   : > { %v742_v21 = vsel %vm726_vm2, %v714_v19, -inf }
 0x1d7   : > { %740 = vmax.xlane.f32.xlu0 %v739_v20 }
 0x1d9   : > { %743 = vmax.xlane.f32.xlu1 %v742_v21 }
 0x1ea   : > { %827 = vrot.lane.b32.xlu1 %v3152_v44, %s3010_s13 }
 0x1ed   : > { %829 = vrot.lane.b32.xlu0 %v3150_v43, %s3010_s13 }
 0x1ee   : > { %825 = vrot.lane.b32.xlu1 %v3160_v48, %s3010_s13 }
 0x1f2   : > { %823 = vrot.lane.b32.xlu1 %v3166_v54, %s3010_s13 }
 0x252   : > { %v735_v22 = vpop.xlane.xlu1 %734 }
 0x253   : > { %v753_v23 = vsub.f32 %v2669_v6, %v735_v22 }
 0x254   : > { %v729_v24 = vpop.xlane.xlu0 %728 }
 0x255   : > { %v763_v25 = vmul.f32 1.442695, %v753_v23  ;;  %v751_v26 = vsub.f32 %v695_v8, %v729_v24 }
 0x256   : > { %v738_v27 = vpop.xlane.xlu1 %737 }
 0x257   : > { %2874 = vpow2.f32 %v763_v25  ;;  %v759_v28 = vmul.f32 1.442695, %v751_v26  ;;  %v754_v29 = vsub.f32 %v2670_v10, %v738_v27 }
 0x258   : > { %v732_v30 = vpop.xlane.xlu0 %731 }
 0x259   : > { %2876 = vpow2.f32 %v759_v28  ;;  %v765_v31 = vmul.f32 1.442695, %v754_v29  ;;  %v752_v32 = vsub.f32 %v698_v12, %v732_v30 }
 0x25b   : > { %2878 = vpow2.f32 %v765_v31  ;;  %v761_v33 = vmul.f32 1.442695, %v752_v32 }
 0x25c   : > { %v747_v35 = vpop.xlane.xlu0 %746 }
 0x25d   : > { %2880 = vpow2.f32 %v761_v33  ;;  %v757_v36 = vsub.f32 %v2673_v14, %v747_v35 }
 0x25e   : > { %v750_v37 = vpop.xlane.xlu1 %749 }
 0x25f   : > { %v771_v38 = vmul.f32 1.442695, %v757_v36  ;;  %v758_v39 = vsub.f32 %v2674_v17, %v750_v37 }
 0x260   : > { %v741_v40 = vpop.xlane.xlu0 %740 }
 0x261   : > { %2882 = vpow2.f32 %v771_v38  ;;  %v773_v41 = vmul.f32 1.442695, %v758_v39  ;;  %v755_v42 = vsub.f32 %v711_v16, %v741_v40 }
 0x262   : > { %v744_v45 = vpop.xlane.xlu1 %743 }
 0x263   : > { %2884 = vpow2.f32 %v773_v41  ;;  %v767_v46 = vmul.f32 1.442695, %v755_v42  ;;  %v756_v47 = vsub.f32 %v714_v19, %v744_v45 }
 0x264   : > { %v3198_v49 = vpop.eup %2874  ;;  %v830_v50 = vpop.permute.xlu0 %829 }
 0x265   : > { %2886 = vpow2.f32 %v767_v46  ;;  %v769_v51 = vmul.f32 1.442695, %v756_v47  ;;  %2675 = vmatprep.subr.bf16.mxu1 %v830_v50  ;;  %v781_v52 = vsel %vm726_vm2, %v3198_v49, 0.0 }
 0x266   : > { %v3202_v53 = vpop.eup %2876  ;;  %782 = vadd.xlane.f32.xlu0 %v781_v52  ;;  %2676 = vmatpush3.bf16.msra.mxu1 %v830_v50  ;;  %v828_v55 = vpop.permute.xlu1 %827 }
 0x267   : > { %2888 = vpow2.f32 %v769_v51  ;;  %2677 = vmatprep.subr.bf16.mxu1 %v828_v55  ;;  %v775_v57 = vsel %vm726_vm2, %v3202_v53, 0.0 }
 0x268   : > { %v2879_v56 = vpop.eup %2878 }
 0x269   : > { %v784_v58 = vsel %vm726_vm2, %v2879_v56, 0.0 }
 0x26a   : > { %v2881_v59 = vpop.eup %2880  ;;  %776 = vadd.xlane.f32.xlu0 %v775_v57  ;;  %785 = vadd.xlane.f32.xlu1 %v784_v58  ;;  %v826_v60 = vpop.permute.xlu1 %825 }
 0x26b   : > { %2678 = vmatpush3.bf16.msra.mxu1 %v828_v55  ;;  %v778_v61 = vsel %vm726_vm2, %v2881_v59, 0.0  ;;  %v632_v55 = vld [vmem:[%s3600_s4] sm:$0xff] }
 0x26c   : > { %2679 = vmatprep.subr.bf16.mxu1 %v826_v60 }
 0x26e   : > { %v3208_v62 = vpop.eup %2882  ;;  %779 = vadd.xlane.f32.xlu1 %v778_v61  ;;  %v824_v63 = vpop.permute.xlu1 %823 }
 0x26f   : > { %2680 = vmatpush3.bf16.msra.mxu1 %v826_v60  ;;  %v793_v1 = vsel %vm726_vm2, %v3208_v62, 0.0 }
 0x270   : > { %v2885_v3 = vpop.eup %2884  ;;  %2681 = vmatprep.subr.bf16.mxu1 %v824_v63  ;;  %794 = vadd.xlane.f32.xlu0 %v793_v1 }
 0x271   : > { %v796_v6 = vsel %vm726_vm2, %v2885_v3, 0.0 }
 0x272   : > { %v2887_v4 = vpop.eup %2886 }
 0x273   : > { %2682 = vmatpush3.bf16.msra.mxu1 %v824_v63  ;;  %v787_v7 = vsel %vm726_vm2, %v2887_v4, 0.0 }
 0x274   : > { %v2889_v8 = vpop.eup %2888  ;;  %797 = vadd.xlane.f32.xlu0 %v796_v6  ;;  %788 = vadd.xlane.f32.xlu1 %v787_v7 }
 0x275   : > { %v790_v9 = vsel %vm726_vm2, %v2889_v8, 0.0 }
 0x278   : > { %791 = vadd.xlane.f32.xlu0 %v790_v9 }
 0x285   : > { %928 = vrot.lane.b32.xlu1 %v3152_v44, %s3011_s14 }
 0x289   : > { %926 = vrot.lane.b32.xlu1 %v3160_v48, %s3011_s14 }
 0x28d   : > { %924 = vrot.lane.b32.xlu1 %v3166_v54, %s3011_s14 }
 0x28e   : > { %930 = vrot.lane.b32.xlu0 %v3150_v43, %s3011_s14 }
 0x291   : > { %918 = vrot.lane.b32.xlu1 %v3176_v2, %s3011_s14 }
 0x292   : > { %916 = vrot.lane.b32.xlu0 %v3143_v34, %s3011_s14 }
 0x295   : > { %922 = vrot.lane.b32.xlu1 %v3182_v5, %s3011_s14 }
 0x296   : > { %920 = vrot.lane.b32.xlu0 %v3174_v0, %s3011_s14 }
 0x2ef   : > { %v783_v10 = vpop.xlane.xlu0 %782 }
 0x2f3   : > { %v777_v11 = vpop.xlane.xlu0 %776  ;;  %v786_v12 = vpop.xlane.xlu1 %785 }
 0x2f4   : > { %2890 = vrcp.f32 %v786_v12 }
 0x2f5   : > { %2892 = vrcp.f32 %v777_v11 }
 0x2f6   : > { %2894 = vrcp.f32 %v783_v10 }
 0x2f7   : > { %v780_v13 = vpop.xlane.xlu1 %779 }
 0x2f8   : > { %2896 = vrcp.f32 %v780_v13 }
 0x2f9   : > { %v795_v14 = vpop.xlane.xlu0 %794 }
 0x2fd   : > { %v798_v15 = vpop.xlane.xlu0 %797  ;;  %v789_v16 = vpop.xlane.xlu1 %788 }
 0x2fe   : > { %2898 = vrcp.f32 %v798_v15 }
 0x2ff   : > { %2900 = vrcp.f32 %v789_v16 }
 0x300   : > { %2902 = vrcp.f32 %v795_v14 }
 0x301   : > { %v792_v17 = vpop.xlane.xlu0 %791  ;;  %v2891_v18 = vpop.eup %2890 }
 0x302   : > { %2904 = vrcp.f32 %v792_v17  ;;  %v2893_v19 = vpop.eup %2892  ;;  %v810_v22 = vmul.f32 %v2891_v18, %v2879_v56  ;;  %v929_v31 = vpop.permute.xlu1 %928 }
 0x303   : > { %v2895_v20 = vpop.eup %2894  ;;  %v807_v24 = vmul.f32 %v2893_v19, %v3202_v53  ;;  %v951_v41 = vsel %vm636_vm1, %v929_v31, 0 }
 0x304   : > { %v809_v26 = vmul.f32 %v2895_v20, %v3198_v49 }
 0x305   : > { %v2897_v21 = vpop.eup %2896  ;;  %v931_v23 = vpop.permute.xlu0 %930 }
 0x306   : > { %2847 = vmatprep.subr.msk.bf16.mxu1 %vm636_vm1, %v931_v23  ;;  %v808_v25 = vmul.f32 %v2897_v21, %v2881_v59  ;;  %v816_v28 = vpack.c.bf16 %v810_v22, %v809_v26  ;;  %v954_v29 = vsel %vm636_vm1, %v931_v23, 0  ;;  %v927_v45 = vpop.permute.xlu1 %926 }
 0x307   : > { %v948_v47 = vsel %vm636_vm1, %v927_v45, 0 }
 0x308   : > { %v815_v27 = vpack.c.bf16 %v808_v25, %v807_v24 }
 0x309   : > { %v917_v46 = vpop.permute.xlu0 %916 }
 0x30a   : > { %2683 = vmatprep.mubr.msk.bf16.mxu1 %vm726_vm2, %v815_v27  ;;  %v925_v49 = vpop.permute.xlu1 %924 }
 0x30b   : > { %2684 = vmatmul.mubr.msk.bf16.vlgmr.msra.gmra.mxu1 %vm726_vm2, %v816_v28  ;;  %v2899_v30 = vpop.eup %2898  ;;  %v945_v50 = vsel %vm636_vm1, %v925_v49, 0 }
 0x30c   : > { %2692 = vmatpush3.bf16.xpose.msra.mxu1 %v954_v29  ;;  %v2901_v32 = vpop.eup %2900  ;;  %v814_v36 = vmul.f32 %v2899_v30, %v2885_v3 }
 0x30d   : > { %2848 = vmatprep.subr.msk.bf16.mxu1 %vm636_vm1, %v929_v31  ;;  %v2903_v33 = vpop.eup %2902  ;;  %v811_v37 = vmul.f32 %v2901_v32, %v2887_v4  ;;  %v921_v52 = vpop.permute.xlu0 %920 }
 0x30e   : > { %v813_v39 = vmul.f32 %v2903_v33, %v3208_v62  ;;  %v919_v51 = vpop.permute.xlu1 %918 }
 0x30f   : > { %v2905_v35 = vpop.eup %2904 }
 0x310   : > { %v812_v38 = vmul.f32 %v2905_v35, %v2889_v8  ;;  %v818_v42 = vpack.c.bf16 %v814_v36, %v813_v39 }
 0x312   : > { %v817_v40 = vpack.c.bf16 %v812_v38, %v811_v37  ;;  %v923_v53 = vpop.permute.xlu1 %922 }
 0x314   : > { %2694 = vmatpush3.bf16.xpose.msra.mxu1 %v951_v41  ;;  %2687 = vmatprep.mubr.msk.bf16.mxu1 %vm726_vm2, %v817_v40 }
 0x315   : > { %2849 = vmatprep.subr.msk.bf16.mxu1 %vm636_vm1, %v927_v45  ;;  %2688 = vmatmul.mubr.msk.bf16.gmra.mxu1 %vm726_vm2, %v818_v42 }
 0x316   : > { %2699 = vmatprep.mubr.msk.bf16.mxu1 %vm636_vm1, %v917_v46 }
 0x31c   : > { %2696 = vmatpush3.bf16.xpose.msra.mxu1 %v948_v47 }
 0x31d   : > { %2850 = vmatprep.subr.msk.bf16.mxu1 %vm636_vm1, %v925_v49 }
 0x324   : > { %2698 = vmatpush3.bf16.xpose.msra.mxu1 %v945_v50 }
 0x325   : > { %2737 = vmatprep.subr.mxu1 %v632_v55 }
 0x32b   : > { %2700 = vmatmul.mubr.msk.bf16.vlgmr.msra.gmra.mxu1 %vm636_vm1, %v919_v51 }
 0x32c   : > { %2703 = vmatprep.mubr.msk.bf16.mxu1 %vm636_vm1, %v921_v52  ;;  %2738 = vmatpush3.msra.mxu1 %v632_v55 }
 0x333   : > { %2704 = vmatmul.mubr.msk.bf16.gmra.mxu1 %vm636_vm1, %v923_v53 }
 0x3cb   : > { %v2685_v56 = vpop.f32.mrf.mxu1 }
 0x3cd   : > { %v881_v57 = vpop.f32.mrf.mxu1 }
 0x3ce   : > { %2739 = vmatprep.mubr.msk.f32.mxu1 %vm636_vm1, %v881_v57 }
 0x3cf   : > { %v2686_v58 = vpop.f32.mrf.mxu1 }
 0x3d1   : > { %v884_v59 = vpop.f32.mrf.mxu1 }
 0x3d2   : > { %2740 = vmatmul.mubr.msk.f32.vlgmr.msra.gmra.mxu1 %vm636_vm1, %v884_v59 }
 0x3d3   : > { %2742 = vmatprep.mubr.msk.f32.mxu1 %vm636_vm1, %v2685_v56 }
 0x3d5   : > { %v2689_v60 = vpop.f32.mrf.mxu1 }
 0x3d6   : > { %2743 = vmatmul.mubr.msk.f32.gmra.mxu1 %vm636_vm1, %v2686_v58 }
 0x3d7   : > { %v897_v61 = vpop.f32.mrf.mxu1 }
 0x3d8   : > { %2745 = vmatprep.mubr.msk.f32.mxu1 %vm636_vm1, %v897_v61 }
 0x3d9   : > { %v2690_v62 = vpop.f32.mrf.mxu1 }
 0x3db   : > { %v900_v63 = vpop.f32.mrf.mxu1 }
 0x3dc   : > { %2746 = vmatmul.mubr.msk.f32.gmra.mxu1 %vm636_vm1, %v900_v63 }
 0x3dd   : > { %2748 = vmatprep.mubr.msk.f32.mxu1 %vm636_vm1, %v2689_v60 }
 0x3e0   : > { %2749 = vmatmul.mubr.msk.f32.gmra.mxu1 %vm636_vm1, %v2690_v62 }
 0x3eb   : > { %v2701_v1 = vpop.f32.mrf.mxu1 }
 0x3ec   : > { %v1027_v8 = vsel %vm726_vm2, %v2701_v1, -inf }
 0x3ed   : > { %v990_v3 = vpop.f32.mrf.mxu1 }
 0x3ee   : > { %v1021_v4 = vsel %vm726_vm2, %v990_v3, -inf }
 0x3ef   : > { %1022 = vmax.xlane.f32.xlu0 %v1021_v4  ;;  %v2702_v6 = vpop.f32.mrf.mxu1 }
 0x3f0   : > { %v1030_v12 = vsel %vm726_vm2, %v2702_v6, -inf }
 0x3f1   : > { %v993_v7 = vpop.f32.mrf.mxu1 }
 0x3f2   : > { %v1024_v9 = vsel %vm726_vm2, %v993_v7, -inf }
 0x3f3   : > { %1028 = vmax.xlane.f32.xlu0 %v1027_v8  ;;  %1025 = vmax.xlane.f32.xlu1 %v1024_v9  ;;  %v2705_v10 = vpop.f32.mrf.mxu1 }
 0x3f4   : > { %v1039_v16 = vsel %vm726_vm2, %v2705_v10, -inf }
 0x3f5   : > { %v1006_v11 = vpop.f32.mrf.mxu1 }
 0x3f6   : > { %v1033_v18 = vsel %vm726_vm2, %v1006_v11, -inf }
 0x3f7   : > { %1031 = vmax.xlane.f32.xlu0 %v1030_v12  ;;  %v2706_v13 = vpop.f32.mrf.mxu1 }
 0x3f8   : > { %v1042_v14 = vsel %vm726_vm2, %v2706_v13, -inf }
 0x3f9   : > { %1043 = vmax.xlane.f32.xlu1 %v1042_v14  ;;  %v1009_v15 = vpop.f32.mrf.mxu1 }
 0x3fa   : > { %v1036_v17 = vsel %vm726_vm2, %v1009_v15, -inf }
 0x3fb   : > { %1040 = vmax.xlane.f32.xlu0 %v1039_v16 }
 0x3fd   : > { %1037 = vmax.xlane.f32.xlu1 %v1036_v17 }
 0x3ff   : > { %1034 = vmax.xlane.f32.xlu0 %v1033_v18 }
 0x40e   : > { %1117 = vrot.lane.b32.xlu1 %v3152_v44, %s3012_s17 }
 0x415   : > { %1119 = vrot.lane.b32.xlu0 %v3150_v43, %s3012_s17 }
 0x478   : > { %v1023_v19 = vpop.xlane.xlu0 %1022 }
 0x479   : > { %v1045_v20 = vsub.f32 %v990_v3, %v1023_v19  ;;  %v633_v19 = vld [vmem:[%s3600_s4 + $0x8] sm:$0xff] }
 0x47b   : > { %v1053_v24 = vmul.f32 1.442695, %v1045_v20 }
 0x47c   : > { %v1029_v21 = vpop.xlane.xlu0 %1028  ;;  %v1026_v22 = vpop.xlane.xlu1 %1025 }
 0x47d   : > { %v1047_v23 = vsub.f32 %v2701_v1, %v1029_v21  ;;  %v1046_v26 = vsub.f32 %v993_v7, %v1026_v22 }
 0x47f   : > { %v1057_v25 = vmul.f32 1.442695, %v1047_v23  ;;  %v1055_v30 = vmul.f32 1.442695, %v1046_v26 }
 0x480   : > { %v1032_v27 = vpop.xlane.xlu0 %1031 }
 0x481   : > { %2906 = vpow2.f32 %v1057_v25  ;;  %v1048_v28 = vsub.f32 %v2702_v6, %v1032_v27 }
 0x482   : > { %v1044_v29 = vpop.xlane.xlu1 %1043  ;;  %2908 = vpow2.f32 %v1053_v24 }
 0x483   : > { %v1059_v31 = vmul.f32 1.442695, %v1048_v28  ;;  %v1052_v40 = vsub.f32 %v2706_v13, %v1044_v29 }
 0x484   : > { %v1041_v32 = vpop.xlane.xlu0 %1040 }
 0x485   : > { %2910 = vpow2.f32 %v1059_v31  ;;  %v1051_v35 = vsub.f32 %v2705_v10, %v1041_v32  ;;  %v1067_v49 = vmul.f32 1.442695, %v1052_v40 }
 0x486   : > { %v1038_v33 = vpop.xlane.xlu1 %1037  ;;  %2912 = vpow2.f32 %v1055_v30 }
 0x487   : > { %v1050_v36 = vsub.f32 %v1009_v15, %v1038_v33  ;;  %v1065_v41 = vmul.f32 1.442695, %v1051_v35 }
 0x488   : > { %v1035_v37 = vpop.xlane.xlu0 %1034 }
 0x489   : > { %v1063_v38 = vmul.f32 1.442695, %v1050_v36  ;;  %v1049_v39 = vsub.f32 %v1006_v11, %v1035_v37 }
 0x48a   : > { %v1118_v47 = vpop.permute.xlu1 %1117 }
 0x48b   : > { %2914 = vpow2.f32 %v1063_v38  ;;  %v1061_v42 = vmul.f32 1.442695, %v1049_v39 }
 0x48c   : > { %v1120_v45 = vpop.permute.xlu0 %1119 }
 0x48d   : > { %2916 = vpow2.f32 %v1061_v42  ;;  %2707 = vmatprep.subr.bf16.mxu0 %v1120_v45 }
 0x48e   : > { %v3265_v46 = vpop.eup %2906  ;;  %2708 = vmatpush3.bf16.msra.mxu0 %v1120_v45  ;;  %2918 = vpow2.f32 %v1065_v41 }
 0x48f   : > { %2709 = vmatprep.subr.bf16.mxu0 %v1118_v47  ;;  %v1075_v50 = vsel %vm726_vm2, %v3265_v46, 0.0  ;;  %v3269_v51 = vpop.eup %2908  ;;  %2920 = vpow2.f32 %v1067_v49 }
 0x490   : > { %1076 = vadd.xlane.f32.xlu0 %v1075_v50  ;;  %v1069_v53 = vsel %vm726_vm2, %v3269_v51, 0.0 }
 0x492   : > { %v3271_v52 = vpop.eup %2910  ;;  %2710 = vmatpush3.bf16.msra.mxu0 %v1118_v47 }
 0x493   : > { %v1078_v55 = vsel %vm726_vm2, %v3271_v52, 0.0  ;;  %v2913_v56 = vpop.eup %2912 }
 0x494   : > { %1070 = vadd.xlane.f32.xlu0 %v1069_v53  ;;  %1079 = vadd.xlane.f32.xlu1 %v1078_v55  ;;  %v1072_v57 = vsel %vm726_vm2, %v2913_v56, 0.0 }
 0x498   : > { %v3278_v58 = vpop.eup %2914  ;;  %1073 = vadd.xlane.f32.xlu1 %v1072_v57 }
 0x499   : > { %v1084_v59 = vsel %vm726_vm2, %v3278_v58, 0.0 }
 0x49a   : > { %v3282_v60 = vpop.eup %2916  ;;  %1085 = vadd.xlane.f32.xlu0 %v1084_v59 }
 0x49b   : > { %v1081_v61 = vsel %vm726_vm2, %v3282_v60, 0.0  ;;  %v3286_v62 = vpop.eup %2918 }
 0x49c   : > { %1082 = vadd.xlane.f32.xlu1 %v1081_v61  ;;  %v1087_v63 = vsel %vm726_vm2, %v3286_v62, 0.0  ;;  %v3290_v1 = vpop.eup %2920 }
 0x49d   : > { %v1090_v3 = vsel %vm726_vm2, %v3290_v1, 0.0 }
 0x4a0   : > { %1088 = vadd.xlane.f32.xlu1 %v1087_v63 }
 0x4a4   : > { %1091 = vadd.xlane.f32.xlu1 %v1090_v3 }
 0x4b0   : > { %1115 = vrot.lane.b32.xlu0 %v3160_v48, %s3012_s17 }
 0x4b4   : > { %1474 = vrot.lane.b32.xlu0 %v3150_v43, %s3013_s18 }
 0x4b5   : > { %1113 = vrot.lane.b32.xlu1 %v3166_v54, %s3012_s17 }
 0x4b8   : > { %1470 = vrot.lane.b32.xlu0 %v3160_v48, %s3013_s18 }
 0x4b9   : > { %1472 = vrot.lane.b32.xlu1 %v3152_v44, %s3013_s18 }
 0x4bc   : > { %1460 = vrot.lane.b32.xlu0 %v3143_v34, %s3013_s18 }
 0x4bd   : > { %1468 = vrot.lane.b32.xlu1 %v3166_v54, %s3013_s18 }
 0x4c0   : > { %1464 = vrot.lane.b32.xlu0 %v3174_v0, %s3013_s18 }
 0x4c1   : > { %1462 = vrot.lane.b32.xlu1 %v3176_v2, %s3013_s18 }
 0x4c4   : > { %1897 = vrot.lane.b32.xlu0 %v3150_v43, %s3014_s19 }
 0x4c5   : > { %1466 = vrot.lane.b32.xlu1 %v3182_v5, %s3013_s18 }
 0x4c8   : > { %1893 = vrot.lane.b32.xlu0 %v3160_v48, %s3014_s19 }
 0x4c9   : > { %1895 = vrot.lane.b32.xlu1 %v3152_v44, %s3014_s19 }
 0x4cc   : > { %1883 = vrot.lane.b32.xlu0 %v3143_v34, %s3014_s19 }
 0x4cd   : > { %1891 = vrot.lane.b32.xlu1 %v3166_v54, %s3014_s19 }
 0x4d0   : > { %1887 = vrot.lane.b32.xlu0 %v3174_v0, %s3014_s19 }
 0x4d1   : > { %1885 = vrot.lane.b32.xlu1 %v3176_v2, %s3014_s19 }
 0x4d5   : > { %1889 = vrot.lane.b32.xlu1 %v3182_v5, %s3014_s19 }
 0x519   : > { %v1077_v4 = vpop.xlane.xlu0 %1076 }
 0x51d   : > { %v1071_v6 = vpop.xlane.xlu0 %1070  ;;  %v1080_v7 = vpop.xlane.xlu1 %1079 }
 0x51e   : > { %2922 = vrcp.f32 %v1071_v6 }
 0x51f   : > { %2924 = vrcp.f32 %v1080_v7 }
 0x520   : > { %2926 = vrcp.f32 %v1077_v4 }
 0x521   : > { %v1074_v8 = vpop.xlane.xlu1 %1073 }
 0x522   : > { %2928 = vrcp.f32 %v1074_v8 }
 0x523   : > { %v1086_v9 = vpop.xlane.xlu0 %1085 }
 0x524   : > { %2930 = vrcp.f32 %v1086_v9 }
 0x525   : > { %v1083_v10 = vpop.xlane.xlu1 %1082 }
 0x526   : > { %2932 = vrcp.f32 %v1083_v10 }
 0x527   : > { %v1116_v34 = vpop.permute.xlu0 %1115 }
 0x528   : > { %2711 = vmatprep.subr.bf16.mxu0 %v1116_v34 }
 0x529   : > { %2712 = vmatpush3.bf16.msra.mxu0 %v1116_v34  ;;  %v1089_v0 = vpop.xlane.xlu1 %1088 }
 0x52a   : > { %2934 = vrcp.f32 %v1089_v0 }
 0x52b   : > { %v2923_v11 = vpop.eup %2922  ;;  %v1475_v27 = vpop.permute.xlu0 %1474 }
 0x52c   : > { %v2925_v2 = vpop.eup %2924  ;;  %v1101_v15 = vmul.f32 %v2923_v11, %v3269_v51  ;;  %v1498_v38 = vsel %vm636_vm1, %v1475_v27, 0 }
 0x52d   : > { %v1092_v5 = vpop.xlane.xlu1 %1091  ;;  %v2927_v12 = vpop.eup %2926  ;;  %v1104_v14 = vmul.f32 %v2925_v2, %v3271_v52 }
 0x52e   : > { %2936 = vrcp.f32 %v1092_v5  ;;  %v1103_v20 = vmul.f32 %v2927_v12, %v3265_v46 }
 0x52f   : > { %v2929_v13 = vpop.eup %2928  ;;  %v1471_v42 = vpop.permute.xlu0 %1470 }
 0x530   : > { %v1102_v16 = vmul.f32 %v2929_v13, %v2913_v56  ;;  %v1110_v23 = vpack.c.bf16 %v1104_v14, %v1103_v20  ;;  %v1492_v51 = vsel %vm636_vm1, %v1471_v42, 0 }
 0x531   : > { %v2931_v17 = vpop.eup %2930  ;;  %v1114_v18 = vpop.permute.xlu1 %1113 }
 0x532   : > { %2713 = vmatprep.subr.bf16.mxu0 %v1114_v18  ;;  %v1109_v21 = vpack.c.bf16 %v1102_v16, %v1101_v15  ;;  %v1106_v25 = vmul.f32 %v2931_v17, %v3278_v58 }
 0x533   : > { %v2933_v22 = vpop.eup %2932  ;;  %2714 = vmatpush3.bf16.msra.mxu0 %v1114_v18  ;;  %v1461_v49 = vpop.permute.xlu0 %1460 }
 0x534   : > { %2715 = vmatprep.mubr.msk.bf16.mxu0 %vm726_vm2, %v1109_v21  ;;  %2723 = vmatprep.subr.mxu0 %v633_v19  ;;  %v1105_v24 = vmul.f32 %v2933_v22, %v3282_v60 }
 0x535   : > { %v1473_v39 = vpop.permute.xlu1 %1472 }
 0x536   : > { %2716 = vmatmul.mubr.msk.bf16.vlgmr.msra.gmra.mxu0 %vm726_vm2, %v1110_v23  ;;  %v1111_v26 = vpack.c.bf16 %v1106_v25, %v1105_v24  ;;  %v1495_v46 = vsel %vm636_vm1, %v1473_v39, 0 }
 0x537   : > { %2724 = vmatpush3.msra.mxu0 %v633_v19  ;;  %v2935_v28 = vpop.eup %2934  ;;  %v1465_v52 = vpop.permute.xlu0 %1464 }
 0x538   : > { %2719 = vmatprep.mubr.msk.bf16.mxu0 %vm726_vm2, %v1111_v26  ;;  %2851 = vmatprep.subr.msk.bf16.mxu0 %vm636_vm1, %v1475_v27  ;;  %v1107_v30 = vmul.f32 %v2935_v28, %v3286_v62 }
 0x539   : > { %v1469_v50 = vpop.permute.xlu1 %1468 }
 0x53a   : > { %v1489_v55 = vsel %vm636_vm1, %v1469_v50, 0 }
 0x53b   : > { %v2937_v29 = vpop.eup %2936  ;;  %v1898_v56 = vpop.permute.xlu0 %1897 }
 0x53c   : > { %v1108_v31 = vmul.f32 %v2937_v29, %v3290_v1  ;;  %v1921_v58 = vsel %vm636_vm1, %v1898_v56, 0 }
 0x53d   : > { %v1463_v53 = vpop.permute.xlu1 %1462 }
 0x53e   : > { %v1112_v32 = vpack.c.bf16 %v1108_v31, %v1107_v30 }
 0x53f   : > { %v1894_v60 = vpop.permute.xlu0 %1893 }
 0x540   : > { %2720 = vmatmul.mubr.msk.bf16.gmra.mxu0 %vm726_vm2, %v1112_v32  ;;  %v1915_v63 = vsel %vm636_vm1, %v1894_v60, 0 }
 0x541   : > { %v1467_v57 = vpop.permute.xlu1 %1466 }
 0x543   : > { %v1884_v61 = vpop.permute.xlu0 %1883 }
 0x545   : > { %v1896_v59 = vpop.permute.xlu1 %1895 }
 0x546   : > { %v1918_v62 = vsel %vm636_vm1, %v1896_v59, 0 }
 0x547   : > { %v1888_v6 = vpop.permute.xlu0 %1887 }
 0x549   : > { %v1892_v1 = vpop.permute.xlu1 %1891 }
 0x54a   : > { %v1912_v3 = vsel %vm636_vm1, %v1892_v1, 0 }
 0x54d   : > { %v1886_v4 = vpop.permute.xlu1 %1885 }
 0x551   : > { %v1890_v7 = vpop.permute.xlu1 %1889 }
 0x5f6   : > { %v2717_v33 = vpop.f32.mrf.mxu0 }
 0x5f8   : > { %v1171_v35 = vpop.f32.mrf.mxu0 }
 0x5f9   : > { %2725 = vmatprep.mubr.msk.f32.mxu0 %vm636_vm1, %v1171_v35 }
 0x5fa   : > { %v2718_v36 = vpop.f32.mrf.mxu0 }
 0x5fc   : > { %v1174_v37 = vpop.f32.mrf.mxu0 }
 0x5fd   : > { %2726 = vmatmul.mubr.msk.f32.vlgmr.msra.gmra.mxu0 %vm636_vm1, %v1174_v37 }
 0x5fe   : > { %2752 = vmatpush3.bf16.xpose.msra.mxu0 %v1498_v38  ;;  %2728 = vmatprep.mubr.msk.f32.mxu0 %vm636_vm1, %v2717_v33 }
 0x5ff   : > { %2852 = vmatprep.subr.msk.bf16.mxu0 %vm636_vm1, %v1473_v39 }
 0x600   : > { %v2721_v40 = vpop.f32.mrf.mxu0 }
 0x601   : > { %2729 = vmatmul.mubr.msk.f32.gmra.mxu0 %vm636_vm1, %v2718_v36 }
 0x602   : > { %v1187_v41 = vpop.f32.mrf.mxu0 }
 0x603   : > { %2731 = vmatprep.mubr.msk.f32.mxu0 %vm636_vm1, %v1187_v41 }
 0x604   : > { %v2722_v45 = vpop.f32.mrf.mxu0 }
 0x606   : > { %2754 = vmatpush3.bf16.xpose.msra.mxu0 %v1495_v46  ;;  %v1190_v47 = vpop.f32.mrf.mxu0 }
 0x607   : > { %2853 = vmatprep.subr.msk.bf16.mxu0 %vm636_vm1, %v1471_v42  ;;  %2732 = vmatmul.mubr.msk.f32.gmra.mxu0 %vm636_vm1, %v1190_v47 }
 0x608   : > { %2734 = vmatprep.mubr.msk.f32.mxu0 %vm636_vm1, %v2721_v40 }
 0x60b   : > { %2735 = vmatmul.mubr.msk.f32.gmra.mxu0 %vm636_vm1, %v2722_v45 }
 0x60c   : > { %2759 = vmatprep.mubr.msk.bf16.mxu0 %vm636_vm1, %v1461_v49 }
 0x60e   : > { %2756 = vmatpush3.bf16.xpose.msra.mxu0 %v1492_v51 }
 0x60f   : > { %2854 = vmatprep.subr.msk.bf16.mxu0 %vm636_vm1, %v1469_v50 }
 0x616   : > { %2758 = vmatpush3.bf16.xpose.msra.mxu0 %v1489_v55 }
 0x617   : > { %2855 = vmatprep.subr.msk.bf16.mxu0 %vm636_vm1, %v1898_v56 }
 0x61d   : > { %2760 = vmatmul.mubr.msk.bf16.vlgmr.msra.gmra.mxu0 %vm636_vm1, %v1463_v53 }
 0x61e   : > { %2763 = vmatprep.mubr.msk.bf16.mxu0 %vm636_vm1, %v1465_v52  ;;  %2798 = vmatpush3.bf16.xpose.msra.mxu0 %v1921_v58 }
 0x61f   : > { %2856 = vmatprep.subr.msk.bf16.mxu0 %vm636_vm1, %v1896_v59 }
 0x625   : > { %2764 = vmatmul.mubr.msk.bf16.gmra.mxu0 %vm636_vm1, %v1467_v57 }
 0x626   : > { %2800 = vmatpush3.bf16.xpose.msra.mxu0 %v1918_v62  ;;  %2805 = vmatprep.mubr.msk.bf16.mxu0 %vm636_vm1, %v1884_v61 }
 0x627   : > { %2857 = vmatprep.subr.msk.bf16.mxu0 %vm636_vm1, %v1894_v60 }
 0x62e   : > { %2802 = vmatpush3.bf16.xpose.msra.mxu0 %v1915_v63 }
 0x62f   : > { %2858 = vmatprep.subr.msk.bf16.mxu0 %vm636_vm1, %v1892_v1 }
 0x636   : > { %2804 = vmatpush3.bf16.xpose.msra.mxu0 %v1912_v3 }
 0x63d   : > { %2806 = vmatmul.mubr.msk.bf16.vlgmr.msra.gmra.mxu0 %vm636_vm1, %v1886_v4 }
 0x63e   : > { %2809 = vmatprep.mubr.msk.bf16.mxu0 %vm636_vm1, %v1888_v6 }
 0x645   : > { %2810 = vmatmul.mubr.msk.bf16.gmra.mxu0 %vm636_vm1, %v1890_v7 }
 0x6bd   : > { %v3360_v8 = vpop.f32.mrf.mxu0 }
 0x6bf   : > { %v3362_v9 = vpop.f32.mrf.mxu0 }
 0x6c1   : > { %v3364_v10 = vpop.f32.mrf.mxu0 }
 0x6c3   : > { %v3366_v34 = vpop.f32.mrf.mxu0 }
 0x6c7   : > { %v3368_v0 = vpop.f32.mrf.mxu0 }
 0x6c9   : > { %v3370_v11 = vpop.f32.mrf.mxu0 }
 0x6cb   : > { %v3372_v2 = vpop.f32.mrf.mxu0 }
 0x6cd   : > { %v3374_v5 = vpop.f32.mrf.mxu0 }
 0x6dd   : > { %v2761_v12 = vpop.f32.mrf.mxu0 }
 0x6de   : > { %v1571_v17 = vsel %vm726_vm2, %v2761_v12, -inf }
 0x6df   : > { %v1534_v13 = vpop.f32.mrf.mxu0 }
 0x6e0   : > { %v1565_v14 = vsel %vm726_vm2, %v1534_v13, -inf }
 0x6e1   : > { %1566 = vmax.xlane.f32.xlu0 %v1565_v14  ;;  %v2762_v15 = vpop.f32.mrf.mxu0 }
 0x6e2   : > { %v1574_v21 = vsel %vm726_vm2, %v2762_v15, -inf }
 0x6e3   : > { %v1537_v16 = vpop.f32.mrf.mxu0 }
 0x6e4   : > { %v1568_v18 = vsel %vm726_vm2, %v1537_v16, -inf }
 0x6e5   : > { %1572 = vmax.xlane.f32.xlu0 %v1571_v17  ;;  %1569 = vmax.xlane.f32.xlu1 %v1568_v18  ;;  %v2765_v19 = vpop.f32.mrf.mxu0 }
 0x6e6   : > { %v1583_v26 = vsel %vm726_vm2, %v2765_v19, -inf }
 0x6e7   : > { %v1550_v20 = vpop.f32.mrf.mxu0 }
 0x6e8   : > { %v1577_v24 = vsel %vm726_vm2, %v1550_v20, -inf }
 0x6e9   : > { %1575 = vmax.xlane.f32.xlu0 %v1574_v21  ;;  %v2766_v22 = vpop.f32.mrf.mxu0 }
 0x6ea   : > { %v1586_v27 = vsel %vm726_vm2, %v2766_v22, -inf }
 0x6eb   : > { %v1553_v23 = vpop.f32.mrf.mxu0 }
 0x6ec   : > { %v1580_v25 = vsel %vm726_vm2, %v1553_v23, -inf }
 0x6ed   : > { %1578 = vmax.xlane.f32.xlu0 %v1577_v24  ;;  %1581 = vmax.xlane.f32.xlu1 %v1580_v25 }
 0x6f1   : > { %1584 = vmax.xlane.f32.xlu0 %v1583_v26  ;;  %1587 = vmax.xlane.f32.xlu1 %v1586_v27 }
 0x76a   : > { %v1567_v28 = vpop.xlane.xlu0 %1566 }
 0x76b   : > { %v1589_v29 = vsub.f32 %v1534_v13, %v1567_v28 }
 0x76d   : > { %v1597_v33 = vmul.f32 1.442695, %v1589_v29 }
 0x76e   : > { %v1573_v30 = vpop.xlane.xlu0 %1572  ;;  %v1570_v31 = vpop.xlane.xlu1 %1569 }
 0x76f   : > { %v1591_v32 = vsub.f32 %v2761_v12, %v1573_v30  ;;  %v1590_v36 = vsub.f32 %v1537_v16, %v1570_v31  ;;  %v3414_v12 = vpop.f32.mrf.mxu0 }
 0x770   : > { %v1994_v21 = vsel %vm726_vm2, %v3414_v12, -inf }
 0x771   : > { %v1601_v35 = vmul.f32 1.442695, %v1591_v32  ;;  %v1599_v39 = vmul.f32 1.442695, %v1590_v36  ;;  %v3418_v14 = vpop.f32.mrf.mxu0 }
 0x772   : > { %v1576_v37 = vpop.xlane.xlu0 %1575  ;;  %v1988_v18 = vsel %vm726_vm2, %v3418_v14, -inf }
 0x773   : > { %2938 = vpow2.f32 %v1601_v35  ;;  %v1592_v38 = vsub.f32 %v2762_v15, %v1576_v37  ;;  %v3424_v17 = vpop.f32.mrf.mxu0 }
 0x774   : > { %2940 = vpow2.f32 %v1597_v33 }
 0x775   : > { %v1603_v40 = vmul.f32 1.442695, %v1592_v38 }
 0x776   : > { %v1579_v41 = vpop.xlane.xlu0 %1578  ;;  %v1582_v63 = vpop.xlane.xlu1 %1581 }
 0x777   : > { %2942 = vpow2.f32 %v1603_v40  ;;  %v1593_v42 = vsub.f32 %v1550_v20, %v1579_v41  ;;  %v1594_v4 = vsub.f32 %v1553_v23, %v1582_v63  ;;  %v3430_v20 = vpop.f32.mrf.mxu0  ;;  %v1997_v23 = vsel %vm726_vm2, %v3424_v17, -inf }
 0x778   : > { %2944 = vpow2.f32 %v1599_v39  ;;  %v1991_v28 = vsel %vm726_vm2, %v3430_v20, -inf }
 0x779   : > { %v1605_v47 = vmul.f32 1.442695, %v1593_v42  ;;  %v1607_v7 = vmul.f32 1.442695, %v1594_v4 }
 0x77a   : > { %v1585_v45 = vpop.xlane.xlu0 %1584  ;;  %v1588_v1 = vpop.xlane.xlu1 %1587 }
 0x77b   : > { %v1595_v46 = vsub.f32 %v2765_v19, %v1585_v45  ;;  %v1596_v3 = vsub.f32 %v2766_v22, %v1588_v1  ;;  %v3434_v22 = vpop.f32.mrf.mxu0 }
 0x77c   : > { %v2006_v26 = vsel %vm726_vm2, %v3434_v22, -inf }
 0x77d   : > { %v1609_v49 = vmul.f32 1.442695, %v1595_v46  ;;  %v1611_v6 = vmul.f32 1.442695, %v1596_v3  ;;  %v3438_v24 = vpop.f32.mrf.mxu0 }
 0x77e   : > { %v2000_v25 = vsel %vm726_vm2, %v3438_v24, -inf }
 0x77f   : > { %2946 = vpow2.f32 %v1609_v49  ;;  %v3446_v27 = vpop.f32.mrf.mxu0 }
 0x780   : > { %v3384_v50 = vpop.eup %2938  ;;  %2948 = vpow2.f32 %v1605_v47  ;;  %v2009_v31 = vsel %vm726_vm2, %v3446_v27, -inf }
 0x781   : > { %v1619_v51 = vsel %vm726_vm2, %v3384_v50, 0.0  ;;  %v3388_v52 = vpop.eup %2940  ;;  %2950 = vpow2.f32 %v1611_v6  ;;  %v3450_v29 = vpop.f32.mrf.mxu0 }
 0x782   : > { %1620 = vadd.xlane.f32.xlu0 %v1619_v51  ;;  %v1613_v55 = vsel %vm726_vm2, %v3388_v52, 0.0  ;;  %2952 = vpow2.f32 %v1607_v7  ;;  %v2003_v30 = vsel %vm726_vm2, %v3450_v29, -inf }
 0x784   : > { %v3390_v53 = vpop.eup %2942 }
 0x785   : > { %v1622_v56 = vsel %vm726_vm2, %v3390_v53, 0.0  ;;  %v3396_v57 = vpop.eup %2944 }
 0x786   : > { %1614 = vadd.xlane.f32.xlu0 %v1613_v55  ;;  %1623 = vadd.xlane.f32.xlu1 %v1622_v56  ;;  %v1616_v58 = vsel %vm726_vm2, %v3396_v57, 0.0 }
 0x78a   : > { %1617 = vadd.xlane.f32.xlu1 %v1616_v58 }
 0x78c   : > { %v3400_v59 = vpop.eup %2946 }
 0x78d   : > { %v1631_v60 = vsel %vm726_vm2, %v3400_v59, 0.0  ;;  %v3404_v61 = vpop.eup %2948 }
 0x78e   : > { %1632 = vadd.xlane.f32.xlu0 %v1631_v60  ;;  %v1625_v62 = vsel %vm726_vm2, %v3404_v61, 0.0  ;;  %v3416_v13 = vpop.eup %2950 }
 0x78f   : > { %v1634_v15 = vsel %vm726_vm2, %v3416_v13, 0.0  ;;  %v3422_v16 = vpop.eup %2952 }
 0x790   : > { %v1628_v19 = vsel %vm726_vm2, %v3422_v16, 0.0 }
 0x792   : > { %1626 = vadd.xlane.f32.xlu0 %v1625_v62 }
 0x79b   : > { %1661 = vrot.lane.b32.xlu1 %v3152_v44, %s3015_s23 }
 0x79f   : > { %1659 = vrot.lane.b32.xlu1 %v3160_v48, %s3015_s23 }
 0x7a8   : > { %1663 = vrot.lane.b32.xlu0 %v3150_v43, %s3015_s23 }
 0x7c3   : > { %1635 = vadd.xlane.f32.xlu1 %v1634_v15 }
 0x7c7   : > { %1989 = vmax.xlane.f32.xlu0 %v1988_v18  ;;  %1629 = vadd.xlane.f32.xlu1 %v1628_v19 }
 0x7cb   : > { %1995 = vmax.xlane.f32.xlu0 %v1994_v21 }
 0x7cf   : > { %1998 = vmax.xlane.f32.xlu0 %v1997_v23 }
 0x7d3   : > { %2001 = vmax.xlane.f32.xlu0 %v2000_v25 }
 0x7d7   : > { %2007 = vmax.xlane.f32.xlu0 %v2006_v26 }
 0x7d8   : > { %1657 = vrot.lane.b32.xlu1 %v3166_v54, %s3015_s23 }
 0x7fc   : > { %1992 = vmax.xlane.f32.xlu1 %v1991_v28 }
 0x800   : > { %2004 = vmax.xlane.f32.xlu1 %v2003_v30 }
 0x804   : > { %2010 = vmax.xlane.f32.xlu1 %v2009_v31 }
 0x80b   : > { %v1621_v32 = vpop.xlane.xlu0 %1620 }
 0x80f   : > { %v1615_v33 = vpop.xlane.xlu0 %1614  ;;  %v1624_v35 = vpop.xlane.xlu1 %1623 }
 0x810   : > { %2954 = vrcp.f32 %v1615_v33 }
 0x813   : > { %v1618_v36 = vpop.xlane.xlu1 %1617 }
 0x814   : > { %2956 = vrcp.f32 %v1618_v36 }
 0x815   : > { %2958 = vrcp.f32 %v1624_v35 }
 0x816   : > { %2960 = vrcp.f32 %v1621_v32 }
 0x817   : > { %v1633_v37 = vpop.xlane.xlu0 %1632  ;;  %v1662_v40 = vpop.permute.xlu1 %1661 }
 0x81b   : > { %v1627_v38 = vpop.xlane.xlu0 %1626  ;;  %v1660_v49 = vpop.permute.xlu1 %1659 }
 0x81d   : > { %v2955_v39 = vpop.eup %2954 }
 0x81e   : > { %v1645_v45 = vmul.f32 %v2955_v39, %v3388_v52 }
 0x81f   : > { %v1664_v41 = vpop.permute.xlu0 %1663 }
 0x820   : > { %2767 = vmatprep.subr.bf16.mxu1 %v1664_v41 }
 0x821   : > { %v2957_v42 = vpop.eup %2956  ;;  %2768 = vmatpush3.bf16.msra.mxu1 %v1664_v41  ;;  %v634_v41 = vld [vmem:[%s3600_s4 + $0x10] sm:$0xff] }
 0x822   : > { %2769 = vmatprep.subr.bf16.mxu1 %v1662_v40  ;;  %v1646_v46 = vmul.f32 %v2957_v42, %v3396_v57  ;;  %v2959_v55 = vpop.eup %2958 }
 0x823   : > { %v2961_v52 = vpop.eup %2960  ;;  %v1648_v57 = vmul.f32 %v2959_v55, %v3390_v53 }
 0x824   : > { %v1653_v47 = vpack.c.bf16 %v1646_v46, %v1645_v45  ;;  %v1647_v1 = vmul.f32 %v2961_v52, %v3384_v50 }
 0x825   : > { %2770 = vmatpush3.bf16.msra.mxu1 %v1662_v40 }
 0x826   : > { %2771 = vmatprep.subr.bf16.mxu1 %v1660_v49  ;;  %2775 = vmatprep.mubr.msk.bf16.mxu1 %vm726_vm2, %v1653_v47  ;;  %v1654_v4 = vpack.c.bf16 %v1648_v57, %v1647_v1 }
 0x829   : > { %2772 = vmatpush3.bf16.msra.mxu1 %v1660_v49 }
 0x84c   : > { %v1636_v51 = vpop.xlane.xlu1 %1635 }
 0x84d   : > { %2962 = vrcp.f32 %v1636_v51 }
 0x84e   : > { %2964 = vrcp.f32 %v1627_v38 }
 0x84f   : > { %2966 = vrcp.f32 %v1633_v37 }
 0x850   : > { %v1990_v56 = vpop.xlane.xlu0 %1989  ;;  %v1630_v58 = vpop.xlane.xlu1 %1629 }
 0x851   : > { %2968 = vrcp.f32 %v1630_v58  ;;  %v2012_v60 = vsub.f32 %v3418_v14, %v1990_v56 }
 0x853   : > { %v2020_v6 = vmul.f32 1.442695, %v2012_v60 }
 0x854   : > { %v1996_v62 = vpop.xlane.xlu0 %1995  ;;  %v1658_v63 = vpop.permute.xlu1 %1657 }
 0x855   : > { %v2014_v3 = vsub.f32 %v3414_v12, %v1996_v62  ;;  %2773 = vmatprep.subr.bf16.mxu1 %v1658_v63 }
 0x856   : > { %2774 = vmatpush3.bf16.msra.mxu1 %v1658_v63 }
 0x857   : > { %v2024_v7 = vmul.f32 1.442695, %v2014_v3  ;;  %2783 = vmatprep.subr.mxu1 %v634_v41 }
 0x858   : > { %v1999_v15 = vpop.xlane.xlu0 %1998 }
 0x859   : > { %2970 = vpow2.f32 %v2024_v7  ;;  %v2015_v18 = vsub.f32 %v3424_v17, %v1999_v15  ;;  %2776 = vmatmul.mubr.msk.bf16.vlgmr.msra.gmra.mxu1 %vm726_vm2, %v1654_v4 }
 0x85a   : > { %v2963_v53 = vpop.eup %2962  ;;  %2972 = vpow2.f32 %v2020_v6  ;;  %2784 = vmatpush3.msra.mxu1 %v634_v41 }
 0x85b   : > { %v2026_v14 = vmul.f32 1.442695, %v2015_v18  ;;  %v2965_v19 = vpop.eup %2964  ;;  %v1652_v12 = vmul.f32 %v2963_v53, %v3416_v13 }
 0x85c   : > { %v2002_v21 = vpop.xlane.xlu0 %2001  ;;  %v2967_v23 = vpop.eup %2966  ;;  %v1649_v26 = vmul.f32 %v2965_v19, %v3404_v61 }
 0x85d   : > { %2974 = vpow2.f32 %v2026_v14  ;;  %v2016_v25 = vsub.f32 %v3438_v24, %v2002_v21  ;;  %v1651_v17 = vmul.f32 %v2967_v23, %v3400_v59 }
 0x85e   : > { %v2969_v50 = vpop.eup %2968 }
 0x85f   : > { %v1650_v28 = vmul.f32 %v2969_v50, %v3422_v16  ;;  %v1656_v33 = vpack.c.bf16 %v1652_v12, %v1651_v17  ;;  %v2028_v35 = vmul.f32 1.442695, %v2016_v25 }
 0x860   : > { %v2008_v30 = vpop.xlane.xlu0 %2007 }
 0x861   : > { %v2018_v31 = vsub.f32 %v3434_v22, %v2008_v30  ;;  %v1655_v32 = vpack.c.bf16 %v1650_v28, %v1649_v26 }
 0x863   : > { %v2032_v36 = vmul.f32 1.442695, %v2018_v31  ;;  %2779 = vmatprep.mubr.msk.bf16.mxu1 %vm726_vm2, %v1655_v32 }
 0x864   : > { %2780 = vmatmul.mubr.msk.bf16.gmra.mxu1 %vm726_vm2, %v1656_v33 }
 0x865   : > { %2976 = vpow2.f32 %v2032_v36 }
 0x866   : > { %v3473_v13 = vpop.eup %2970  ;;  %2978 = vpow2.f32 %v2028_v35 }
 0x867   : > { %v2042_v61 = vsel %vm726_vm2, %v3473_v13, 0.0  ;;  %v3477_v16 = vpop.eup %2972 }
 0x868   : > { %2043 = vadd.xlane.f32.xlu0 %v2042_v61  ;;  %v2036_v22 = vsel %vm726_vm2, %v3477_v16, 0.0 }
 0x86a   : > { %v3479_v59 = vpop.eup %2974 }
 0x86b   : > { %v2045_v24 = vsel %vm726_vm2, %v3479_v59, 0.0 }
 0x86c   : > { %2037 = vadd.xlane.f32.xlu0 %v2036_v22  ;;  %2046 = vadd.xlane.f32.xlu1 %v2045_v24 }
 0x872   : > { %v3485_v37 = vpop.eup %2976 }
 0x873   : > { %v2054_v38 = vsel %vm726_vm2, %v3485_v37, 0.0  ;;  %v3489_v39 = vpop.eup %2978 }
 0x874   : > { %2055 = vadd.xlane.f32.xlu0 %v2054_v38  ;;  %v2048_v40 = vsel %vm726_vm2, %v3489_v39, 0.0 }
 0x878   : > { %2049 = vadd.xlane.f32.xlu0 %v2048_v40 }
 0x885   : > { %v1993_v42 = vpop.xlane.xlu1 %1992 }
 0x886   : > { %v2013_v45 = vsub.f32 %v3430_v20, %v1993_v42 }
 0x888   : > { %v2022_v46 = vmul.f32 1.442695, %v2013_v45 }
 0x889   : > { %v2005_v51 = vpop.xlane.xlu1 %2004 }
 0x88a   : > { %2980 = vpow2.f32 %v2022_v46  ;;  %v2017_v56 = vsub.f32 %v3450_v29, %v2005_v51  ;;  %v3515_v29 = vpop.f32.mrf.mxu1 }
 0x88c   : > { %v2030_v52 = vmul.f32 1.442695, %v2017_v56  ;;  %v3517_v63 = vpop.f32.mrf.mxu1 }
 0x88d   : > { %v2011_v55 = vpop.xlane.xlu1 %2010 }
 0x88e   : > { %2086 = vrot.lane.b32.xlu0 %v3150_v43, %s3016_s26  ;;  %v2019_v20 = vsub.f32 %v3446_v27, %v2011_v55  ;;  %v3519_v3 = vpop.f32.mrf.mxu1 }
 0x890   : > { %v2034_v58 = vmul.f32 1.442695, %v2019_v20  ;;  %v3521_v6 = vpop.f32.mrf.mxu1 }
 0x892   : > { %2982 = vpow2.f32 %v2034_v58  ;;  %v3523_v7 = vpop.f32.mrf.mxu1 }
 0x893   : > { %2984 = vpow2.f32 %v2030_v52  ;;  %v1427_v52 = vadd.f32 %v3515_v29, %v3360_v8  ;;  %v1447_v8 = vadd.f32 %v3523_v7, %v3368_v0 }
 0x894   : > { %v3525_v15 = vpop.f32.mrf.mxu1 }
 0x896   : > { %v3527_v18 = vpop.f32.mrf.mxu1 }
 0x897   : > { %v3498_v47 = vpop.eup %2980 }
 0x898   : > { %v2039_v49 = vsel %vm726_vm2, %v3498_v47, 0.0 }
 0x899   : > { %2040 = vadd.xlane.f32.xlu1 %v2039_v49 }
 0x89f   : > { %v3506_v43 = vpop.eup %2982 }
 0x8a0   : > { %v2057_v57 = vsel %vm726_vm2, %v3506_v43, 0.0  ;;  %v3510_v60 = vpop.eup %2984 }
 0x8aa   : > { %2084 = vrot.lane.b32.xlu1 %v3152_v44, %s3016_s26  ;;  %v2051_v44 = vsel %vm726_vm2, %v3510_v60, 0.0 }
 0x8ae   : > { %2082 = vrot.lane.b32.xlu1 %v3160_v48, %s3016_s26 }
 0x8d2   : > { %2058 = vadd.xlane.f32.xlu1 %v2057_v57 }
 0x8d6   : > { %2052 = vadd.xlane.f32.xlu1 %v2051_v44 }
 0x8e7   : > { %2080 = vrot.lane.b32.xlu1 %v3166_v54, %s3016_s26  ;;  %v3529_v54 = vpop.f32.mrf.mxu1 }
 0x8f1   : > { %v2044_v48 = vpop.xlane.xlu0 %2043 }
 0x8f5   : > { %v2038_v27 = vpop.xlane.xlu0 %2037  ;;  %v2047_v21 = vpop.xlane.xlu1 %2046 }
 0x8f6   : > { %2986 = vrcp.f32 %v2038_v27  ;;  %v1432_v27 = vadd.f32 %v3521_v6, %v3366_v34  ;;  %v1452_v34 = vadd.f32 %v3529_v54, %v3374_v5  ;;  %v2489_v54 = vld [vmem:[%s3603_s7] ss:$0 sm:$0xff] }
 0x8fd   : > { %v2056_v62 = vpop.xlane.xlu0 %2055 }
 0x901   : > { %v2050_v1 = vpop.xlane.xlu0 %2049 }
 0x903   : > { %v2987_v31 = vpop.eup %2986 }
 0x904   : > { %v2068_v33 = vmul.f32 %v2987_v31, %v3477_v16 }
 0x905   : > { %v2087_v4 = vpop.permute.xlu0 %2086 }
 0x906   : > { %2813 = vmatprep.subr.bf16.mxu1 %v2087_v4 }
 0x919   : > { %v2777_v53 = vpop.f32.mrf.mxu1 }
 0x91b   : > { %v1715_v14 = vpop.f32.mrf.mxu1 }
 0x91c   : > { %2785 = vmatprep.mubr.msk.f32.mxu1 %vm636_vm1, %v1715_v14 }
 0x91d   : > { %v2778_v19 = vpop.f32.mrf.mxu1 }
 0x91f   : > { %v1718_v23 = vpop.f32.mrf.mxu1 }
 0x920   : > { %2786 = vmatmul.mubr.msk.f32.vlgmr.msra.gmra.mxu1 %vm636_vm1, %v1718_v23 }
 0x921   : > { %2814 = vmatpush3.bf16.msra.mxu1 %v2087_v4  ;;  %2788 = vmatprep.mubr.msk.f32.mxu1 %vm636_vm1, %v2777_v53 }
 0x922   : > { %v2041_v50 = vpop.xlane.xlu1 %2040 }
 0x923   : > { %2988 = vrcp.f32 %v2041_v50 }
 0x924   : > { %v2781_v12 = vpop.f32.mrf.mxu1  ;;  %2789 = vmatmul.mubr.msk.f32.gmra.mxu1 %vm636_vm1, %v2778_v19  ;;  %2990 = vrcp.f32 %v2047_v21 }
 0x925   : > { %2992 = vrcp.f32 %v2044_v48 }
 0x926   : > { %v1731_v25 = vpop.f32.mrf.mxu1  ;;  %v2085_v26 = vpop.permute.xlu1 %2084 }
 0x927   : > { %2791 = vmatprep.mubr.msk.f32.mxu1 %vm636_vm1, %v1731_v25  ;;  %2815 = vmatprep.subr.bf16.mxu1 %v2085_v26 }
 0x928   : > { %v2782_v28 = vpop.f32.mrf.mxu1  ;;  %2816 = vmatpush3.bf16.msra.mxu1 %v2085_v26 }
 0x92a   : > { %v1734_v30 = vpop.f32.mrf.mxu1  ;;  %v2083_v17 = vpop.permute.xlu1 %2082 }
 0x92b   : > { %2792 = vmatmul.mubr.msk.f32.gmra.mxu1 %vm636_vm1, %v1734_v30  ;;  %2817 = vmatprep.subr.bf16.mxu1 %v2083_v17 }
 0x92c   : > { %2794 = vmatprep.mubr.msk.f32.mxu1 %vm636_vm1, %v2781_v12  ;;  %2818 = vmatpush3.bf16.msra.mxu1 %v2083_v17 }
 0x92f   : > { %2795 = vmatmul.mubr.msk.f32.gmra.mxu1 %vm636_vm1, %v2782_v28 }
 0x930   : > { %v2989_v32 = vpop.eup %2988 }
 0x931   : > { %v2069_v35 = vmul.f32 %v2989_v32, %v3498_v47  ;;  %v2991_v22 = vpop.eup %2990 }
 0x932   : > { %v2993_v38 = vpop.eup %2992  ;;  %v2071_v40 = vmul.f32 %v2991_v22, %v3479_v59 }
 0x933   : > { %v2076_v36 = vpack.c.bf16 %v2069_v35, %v2068_v33  ;;  %v2070_v16 = vmul.f32 %v2993_v38, %v3473_v13  ;;  %v635_v13 = vld [vmem:[%s3600_s4 + $0x18] sm:$0xff] }
 0x935   : > { %2821 = vmatprep.mubr.msk.bf16.mxu1 %vm726_vm2, %v2076_v36  ;;  %v2077_v42 = vpack.c.bf16 %v2071_v40, %v2070_v16 }
 0x95b   : > { %v2059_v61 = vpop.xlane.xlu1 %2058 }
 0x95c   : > { %2994 = vrcp.f32 %v2059_v61 }
 0x95d   : > { %2996 = vrcp.f32 %v2050_v1 }
 0x95e   : > { %2998 = vrcp.f32 %v2056_v62 }
 0x95f   : > { %v2053_v24 = vpop.xlane.xlu1 %2052 }
 0x960   : > { %3000 = vrcp.f32 %v2053_v24 }
 0x963   : > { %v2081_v41 = vpop.permute.xlu1 %2080 }
 0x964   : > { %2819 = vmatprep.subr.bf16.mxu1 %v2081_v41 }
 0x965   : > { %2820 = vmatpush3.bf16.msra.mxu1 %v2081_v41 }
 0x966   : > { %2829 = vmatprep.subr.mxu1 %v635_v13 }
 0x968   : > { %2822 = vmatmul.mubr.msk.bf16.vlgmr.msra.gmra.mxu1 %vm726_vm2, %v2077_v42 }
 0x969   : > { %v2995_v45 = vpop.eup %2994  ;;  %2830 = vmatpush3.msra.mxu1 %v635_v13 }
 0x96a   : > { %v2997_v46 = vpop.eup %2996  ;;  %v2075_v51 = vmul.f32 %v2995_v45, %v3506_v43  ;;  %v1422_v43 = vadd.f32 %v3517_v63, %v3362_v9  ;;  %v1442_v9 = vadd.f32 %v3525_v15, %v3370_v11 }
 0x96b   : > { %v2999_v47 = vpop.eup %2998  ;;  %v2072_v55 = vmul.f32 %v2997_v46, %v3489_v39 }
 0x96c   : > { %v2074_v59 = vmul.f32 %v2999_v47, %v3485_v37 }
 0x96d   : > { %v3001_v49 = vpop.eup %3000 }
 0x96e   : > { %v2073_v20 = vmul.f32 %v3001_v49, %v3510_v60  ;;  %v2079_v58 = vpack.c.bf16 %v2075_v51, %v2074_v59  ;;  %v1437_v60 = vadd.f32 %v3519_v3, %v3364_v10  ;;  %v1457_v10 = vadd.f32 %v3527_v18, %v3372_v2 }
 0x970   : > { %v2078_v56 = vpack.c.bf16 %v2073_v20, %v2072_v55 }
 0x972   : > { %2825 = vmatprep.mubr.msk.bf16.mxu1 %vm726_vm2, %v2078_v56 }
 0x973   : > { %2826 = vmatmul.mubr.msk.bf16.gmra.mxu1 %vm726_vm2, %v2079_v58 }
 0x9e0   : > { %v2787_v39 = vpop.f32.mrf.mxu1 }
 0x9e1   : > { %v1876_v37 = vadd.f32 %v2787_v39, %v1427_v52 }
 0x9e2   : > { %v1836_v57 = vpop.f32.mrf.mxu1 }
 0x9e3   : > { %v1875_v44 = vadd.f32 %v1836_v57, %v1422_v43 }
 0x9e4   : > { %v2790_v48 = vpop.f32.mrf.mxu1 }
 0x9e5   : > { %v1878_v62 = vadd.f32 %v2790_v48, %v1437_v60 }
 0x9e6   : > { %v1846_v1 = vpop.f32.mrf.mxu1 }
 0x9e7   : > { %v1877_v4 = vadd.f32 %v1846_v1, %v1432_v27 }
 0x9eb   : > { %v2793_v29 = vpop.f32.mrf.mxu1 }
 0x9ec   : > { %v1880_v63 = vadd.f32 %v2793_v29, %v1447_v8 }
 0x9ed   : > { %v1856_v53 = vpop.f32.mrf.mxu1 }
 0x9ee   : > { %v1879_v3 = vadd.f32 %v1856_v53, %v1442_v9 }
 0x9ef   : > { %v2796_v14 = vpop.f32.mrf.mxu1 }
 0x9f0   : > { %v1882_v6 = vadd.f32 %v2796_v14, %v1457_v10 }
 0x9f1   : > { %v1866_v19 = vpop.f32.mrf.mxu1 }
 0x9f2   : > { %v1881_v21 = vadd.f32 %v1866_v19, %v1452_v34 }
 0xa28   : > { %v2823_v23 = vpop.f32.mrf.mxu1 }
 0xa2a   : > { %v2138_v50 = vpop.f32.mrf.mxu1 }
 0xa2b   : > { %2831 = vmatprep.mubr.msk.f32.mxu1 %vm636_vm1, %v2138_v50 }
 0xa2c   : > { %v2824_v0 = vpop.f32.mrf.mxu1 }
 0xa2e   : > { %v2141_v11 = vpop.f32.mrf.mxu1 }
 0xa2f   : > { %2832 = vmatmul.mubr.msk.f32.vlgmr.msra.gmra.mxu1 %vm636_vm1, %v2141_v11 }
 0xa30   : > { %2834 = vmatprep.mubr.msk.f32.mxu1 %vm636_vm1, %v2823_v23 }
 0xa33   : > { %v2827_v2 = vpop.f32.mrf.mxu1  ;;  %2835 = vmatmul.mubr.msk.f32.gmra.mxu1 %vm636_vm1, %v2824_v0 }
 0xa35   : > { %v2154_v7 = vpop.f32.mrf.mxu1 }
 0xa36   : > { %2837 = vmatprep.mubr.msk.f32.mxu1 %vm636_vm1, %v2154_v7 }
 0xa37   : > { %v2828_v5 = vpop.f32.mrf.mxu1 }
 0xa39   : > { %v2157_v15 = vpop.f32.mrf.mxu1 }
 0xa3a   : > { %2838 = vmatmul.mubr.msk.f32.gmra.mxu1 %vm636_vm1, %v2157_v15 }
 0xa3b   : > { %2840 = vmatprep.mubr.msk.f32.mxu1 %vm636_vm1, %v2827_v2 }
 0xa3e   : > { %2841 = vmatmul.mubr.msk.f32.gmra.mxu1 %vm636_vm1, %v2828_v5 }
 0xaef   : > { %v2833_v18 = vpop.f32.mrf.mxu1 }
 0xaf0   : > { %v2299_v12 = vadd.f32 %v2833_v18, %v1876_v37 }
 0xaf1   : > { %v2259_v25 = vpop.f32.mrf.mxu1 }
 0xaf2   : > { %v2314_v26 = vadd.f32 %v2489_v54, %v2299_v12  ;;  %v2298_v28 = vadd.f32 %v2259_v25, %v1875_v44 }
 0xaf3   : > { %v2836_v30 = vpop.f32.mrf.mxu1 }
 0xaf4   : > { %2322 = vst.msk [vmem:[%s325_s12 + $0x8] sm:$0xff] %vm354_vm0, %v2314_v26  ;;  %v2313_v17 = vadd.f32 %v2489_v54, %v2298_v28  ;;  %v2301_v31 = vadd.f32 %v2836_v30, %v1878_v62 }
 0xaf5   : > { %v2269_v32 = vpop.f32.mrf.mxu1 }
 0xaf6   : > { %2321 = vst.msk [vmem:[%s325_s12] sm:$0xff] %vm354_vm0, %v2313_v17  ;;  %v2316_v33 = vadd.f32 %v2489_v54, %v2301_v31  ;;  %v2300_v35 = vadd.f32 %v2269_v32, %v1877_v4 }
 0xaf8   : > { %2324 = vst.msk [vmem:[%s325_s12 + $0x18] sm:$0xff] %vm354_vm0, %v2316_v33  ;;  %v2315_v36 = vadd.f32 %v2489_v54, %v2300_v35 }
 0xafa   : > { %2323 = vst.msk [vmem:[%s325_s12 + $0x10] sm:$0xff] %vm354_vm0, %v2315_v36  ;;  %v2839_v61 = vpop.f32.mrf.mxu1 }
 0xafb   : > { %v2303_v22 = vadd.f32 %v2839_v61, %v1880_v63 }
 0xafc   : > { %v2279_v24 = vpop.f32.mrf.mxu1 }
 0xafd   : > { %v2318_v38 = vadd.f32 %v2489_v54, %v2303_v22  ;;  %v2302_v40 = vadd.f32 %v2279_v24, %v1879_v3 }
 0xafe   : > { %v2842_v41 = vpop.f32.mrf.mxu1 }
 0xaff   : > { %2326 = vst.msk [vmem:[%s325_s12 + $0x28] sm:$0xff] %vm354_vm0, %v2318_v38  ;;  %v2317_v16 = vadd.f32 %v2489_v54, %v2302_v40  ;;  %v2305_v42 = vadd.f32 %v2842_v41, %v1882_v6 }
 0xb00   : > { %v2289_v45 = vpop.f32.mrf.mxu1 }
 0xb01   : > { %2325 = vst.msk [vmem:[%s325_s12 + $0x20] sm:$0xff] %vm354_vm0, %v2317_v16  ;;  %v2320_v46 = vadd.f32 %v2489_v54, %v2305_v42  ;;  %v2304_v47 = vadd.f32 %v2289_v45, %v1881_v21 }
 0xb03   : > { %2328 = vst.msk [vmem:[%s325_s12 + $0x38] sm:$0xff] %vm354_vm0, %v2320_v46  ;;  %v2319_v49 = vadd.f32 %v2489_v54, %v2304_v47 }
 0xb05   : > { %2327 = vst.msk [vmem:[%s325_s12 + $0x30] sm:$0xff] %vm354_vm0, %v2319_v49 }
 0xb06 PF: > { %s18_s27 = sadd.s32 1, %s3008_s27  }
 0xb07   : > { %p15_p4 = scmp.ge.s32.totalorder %s18_s27, 4  }
 0xb09   :  { %17 = sbr.rel (!%p15_p4) target bundleno = 1 (0x1), region = 85 }

</bundles_post_ra>
